<compile_context>
chip_gen: v7x
topology: tpu7x:2x2x1
jax: 0.10.0
libtpu: 0.0.40
codegen_flags: <defaults>
</compile_context>

<pallas_src>
import numpy as np

import jax
import jax.numpy as jnp
from jax.experimental import pallas as pl
from jax.experimental.pallas import tpu as pltpu


# ---------------------------------------------------------------------------
# Banded conv weights: fold (kw, cin) contraction + horizontal zero-pad into
# one matmul per vertical tap kh.  Built once at model-construction time.
# ---------------------------------------------------------------------------

def _conv3x3_to_band(w_oihw, width):
    """Return band of shape (3, Cin*W, Cout*W) with

        band[kh, ci*W + wi, co*W + wo] = w[co, ci, kh, wi - wo + 1]

    for |wi - wo| <= 1 (zero elsewhere).  For every vertical tap kh,
        out_rows (H, Cout*W)  =  in_rows_shifted_by_kh (H, Cin*W) @ band[kh]
    computes the full horizontal conv + channel contraction in one MXU matmul,
    with lanes laid out channel-major (lane = c*W + w) on both sides.  Taps
    that would read outside [0, W) are simply absent => horizontal zero pad.
    """
    cout, cin, _, _ = w_oihw.shape
    wn = np.asarray(w_oihw, np.float32)
    band = np.zeros((3, cin * width, cout * width), np.float32)
    for kh in range(3):
        for kw in range(3):
            for wo in range(width):
                wi = wo + kw - 1
                if 0 <= wi < width:
                    band[kh, wi::width, wo::width] = wn[:, :, kh, kw].T
    return band


# ---------------------------------------------------------------------------
# Fused kernel: Conv3x3+Bias+ReLU -> Conv3x3+Bias+ReLU, one batch element per
# grid step, both activations emitted in NCHW.
# ---------------------------------------------------------------------------

def _fused_two_block_kernel(x_ref, bw1_ref, b1_ref, bw2_ref, b2_ref,
                            act0_ref, act1_ref, xpad1_ref, xpad2_ref):
    """One batch element.

    x_ref   : (1, Cin, H, W)      NCHW input block
    bw1_ref : (3, Cin*W, Cmid*W)  banded layer-1 weights (per vertical tap kh)
    b1_ref  : (1, Cmid*W)         layer-1 bias, lane = co*W + w
    bw2_ref : (3, Cmid*W, Cmid*W) banded layer-2 weights
    b2_ref  : (1, Cmid*W)         layer-2 bias
    act0_ref, act1_ref : (1, Cmid, H, W)  NCHW post-ReLU outputs
    xpad1_ref : (Cin, H+2, W)     VMEM scratch, vertically zero-padded input
    xpad2_ref : (H+2, Cmid*W)     VMEM scratch, vertically zero-padded act0
    """
    cin, hp2, w = xpad1_ref.shape
    h = hp2 - 2
    cw = xpad2_ref.shape[1]          # Cmid * W  (= 128 here: lane-dense)
    cmid = cw // w

    # ---- layer 1: Conv3x3(pad=1) + bias + ReLU ----------------------------
    # Vertical zero padding lives in a VMEM scratch; horizontal padding is
    # already folded into bw1.  Input stays in its native NCHW layout (per
    # channel (H, W) slabs), so no input relayout is needed.
    xpad1_ref[...] = jnp.zeros_like(xpad1_ref)
    xpad1_ref[:, 1:h + 1, :] = x_ref[0]                      # (Cin, H, W)

    acc1 = jnp.zeros((h, cw), jnp.float32)
    for kh in range(3):
        for ci in range(cin):
            lhs = xpad1_ref[ci, kh:kh + h, :]                # (H, W)
            rhs = bw1_ref[kh, ci * w:(ci + 1) * w, :]        # (W, Cmid*W)
            acc1 += jnp.dot(lhs, rhs, preferred_element_type=jnp.float32)
    act0 = jnp.maximum(acc1 + b1_ref[...], 0.0)              # (H, Cmid*W)

    # ---- layer 2: Conv3x3(pad=1) + bias + ReLU (input never leaves VMEM) --
    xpad2_ref[...] = jnp.zeros_like(xpad2_ref)
    xpad2_ref[1:h + 1, :] = act0

    acc2 = jnp.zeros((h, cw), jnp.float32)
    for kh in range(3):
        acc2 += jnp.dot(xpad2_ref[kh:kh + h, :], bw2_ref[kh],
                        preferred_element_type=jnp.float32)  # (H,128)x(128,128)
    act1 = jnp.maximum(acc2 + b2_ref[...], 0.0)              # (H, Cmid*W)

    # ---- NCHW outputs straight from the kernel -----------------------------
    # Channel-major lanes make each output channel a contiguous 16-lane slice
    # of the accumulator: per-channel (H, W) stores, no reshape/transpose
    # relayout on the store path (cf. review item on the old lane-dense store).
    for co in range(cmid):
        act0_ref[0, co, :, :] = act0[:, co * w:(co + 1) * w]
        act1_ref[0, co, :, :] = act1[:, co * w:(co + 1) * w]


def _fused_two_block_forward(x_nchw, bw1, b1v, bw2, b2v, cmid):
    """Single pallas_call computing both fused Conv+Bias+ReLU blocks."""
    n, cin, h, w = x_nchw.shape
    cw = cmid * w

    return pl.pallas_call(
        _fused_two_block_kernel,
        out_shape=(jax.ShapeDtypeStruct((n, cmid, h, w), jnp.float32),
                   jax.ShapeDtypeStruct((n, cmid, h, w), jnp.float32)),
        grid=(n,),                                   # batch axis: halo-free,
        in_specs=[                                   # shards across v7x TCs
            pl.BlockSpec((1, cin, h, w), lambda i: (i, 0, 0, 0)),
            pl.BlockSpec((3, cin * w, cw), lambda i: (0, 0, 0)),
            pl.BlockSpec((1, cw), lambda i: (0, 0)),
            pl.BlockSpec((3, cw, cw), lambda i: (0, 0, 0)),
            pl.BlockSpec((1, cw), lambda i: (0, 0)),
        ],
        out_specs=(
            pl.BlockSpec((1, cmid, h, w), lambda i: (i, 0, 0, 0)),
            pl.BlockSpec((1, cmid, h, w), lambda i: (i, 0, 0, 0)),
        ),
        scratch_shapes=[
            pltpu.VMEM((cin, h + 2, w), jnp.float32),   # padded layer-1 input
            pltpu.VMEM((h + 2, cw), jnp.float32),       # padded layer-2 input
        ],
        compiler_params=pltpu.CompilerParams(
            dimension_semantics=("parallel",),
            vmem_limit_bytes=16 * 1024 * 1024),
    )(x_nchw, bw1, b1v, bw2, b2v)


# ---------------------------------------------------------------------------
# The wrapped model (its "children" are the two fused Conv+Bias+ReLU blocks)
# ---------------------------------------------------------------------------

class TwoBlockConvNet:
    """Small CNN: two Conv3x3(pad=1)+Bias+ReLU children, evaluated by one
    fused pallas_call that returns every child's output."""

    num_layers = 2

    def __init__(self, w1, b1, w2, b2, width):
        self.width = width
        self.cin = int(w1.shape[1])
        self.cmid = int(w1.shape[0])
        self.bw1 = jnp.asarray(_conv3x3_to_band(w1, width))           # (3, Cin*W, Cmid*W)
        self.bw2 = jnp.asarray(_conv3x3_to_band(w2, width))           # (3, Cmid*W, Cmid*W)
        self.b1v = jnp.asarray(np.repeat(np.asarray(b1, np.float32), width)[None, :])
        self.b2v = jnp.asarray(np.repeat(np.asarray(b2, np.float32), width)[None, :])

    def forward_all(self, x_nchw):
        n, c, h, w = x_nchw.shape
        assert c == self.cin and w == self.width
        return _fused_two_block_forward(
            x_nchw, self.bw1, self.b1v, self.bw2, self.b2v, self.cmid)


def make_model(key, cin=4, cmid=8, width=16):
    """Deterministic parameters + fused model."""
    k1, k2, k3, k4 = jax.random.split(key, 4)
    w1 = 0.1 * jax.random.normal(k1, (cmid, cin, 3, 3), dtype=jnp.float32)
    b1 = 0.1 * jax.random.normal(k2, (cmid,), dtype=jnp.float32)
    w2 = 0.1 * jax.random.normal(k3, (cmid, cmid, 3, 3), dtype=jnp.float32)
    b2 = 0.1 * jax.random.normal(k4, (cmid,), dtype=jnp.float32)
    model = TwoBlockConvNet(w1, b1, w2, b2, width=width)
    return model, ((w1, b1), (w2, b2))


# ---------------------------------------------------------------------------
# NetWithActivations equivalent
# ---------------------------------------------------------------------------

class NetWithActivations:
    """JAX/Pallas mirror of the PyTorch NetWithActivations module.

    The wrapped model's children are the two fused Conv3x3+Bias+ReLU blocks;
    the whole layer stack runs as ONE fused pallas_call and the requested
    per-layer activations are selected from its outputs (same tensors the
    original layer-by-layer loop would record).

    NOTE: layer indices refer to the fused Conv+ReLU children (post-ReLU
    outputs).  A caller wanting pre-activation conv outputs of an unfused
    Conv/ReLU/... stack would need unfused children instead.
    """

    def __init__(self, model, layer_nums):
        self.model = model
        n_layers = model.num_layers
        nums = [l + n_layers if l < 0 else l for l in layer_nums]
        self.layer_nums = set(sorted(nums))

    def __call__(self, x):
        all_acts = self.model.forward_all(x)    # one activation per child
        return {ln: all_acts[ln] for ln in sorted(self.layer_nums)}


if __name__ == "__main__":
    key = jax.random.PRNGKey(0)
    k_params, k_input = jax.random.split(key)

    # Small NCHW input consistent with a conv model: (batch=2, C=4, 16, 16).
    x = jax.random.normal(k_input, (2, 4, 16, 16), dtype=jnp.float32)

    model, raw_params = make_model(k_params, cin=4, cmid=8, width=16)
    # Records the post-ReLU output of both fused blocks (== layers {1, 3} of
    # the unfused Conv/ReLU/Conv/ReLU stack).
    net = NetWithActivations(model, layer_nums=[0, -1])

    fwd = jax.jit(lambda xx: net(xx))
    activations = fwd(x)
    activations = {k: jax.block_until_ready(v) for k, v in activations.items()}

    # Sanity check against a pure-JAX reference (same math, no Pallas).
    def ref_conv(xi, wgt, b):
        y = jax.lax.conv_general_dilated(
            xi, wgt, window_strides=(1, 1), padding=((1, 1), (1, 1)),
            dimension_numbers=("NCHW", "OIHW", "NCHW"))
        return y + b[None, :, None, None]

    (w1, b1), (w2, b2) = raw_params
    r0 = jnp.maximum(ref_conv(x, w1, b1), 0.0)
    r1 = jnp.maximum(ref_conv(r0, w2, b2), 0.0)

    assert set(activations.keys()) == {0, 1}
    assert activations[0].shape == (2, 8, 16, 16)
    assert activations[1].shape == (2, 8, 16, 16)
    assert jnp.allclose(activations[0], r0, atol=1e-5, rtol=1e-5)
    assert jnp.allclose(activations[1], r1, atol=1e-5, rtol=1e-5)

    print("KERNEL_OK")
</pallas_src>

<mosaic_0001>
module attributes {stable_mosaic.version = 11 : i64} {
  func.func @_fused_two_block_kernel(%arg0: i32, %arg1: memref<1x4x16x16xf32, #tpu.memory_space<vmem>>, %arg2: memref<3x64x128xf32, #tpu.memory_space<vmem>>, %arg3: memref<1x128xf32, #tpu.memory_space<vmem>>, %arg4: memref<3x128x128xf32, #tpu.memory_space<vmem>>, %arg5: memref<1x128xf32, #tpu.memory_space<vmem>>, %arg6: memref<1x8x16x16xf32, #tpu.memory_space<vmem>>, %arg7: memref<1x8x16x16xf32, #tpu.memory_space<vmem>>, %arg8: memref<4x18x16xf32, #tpu.memory_space<vmem>>, %arg9: memref<18x128xf32, #tpu.memory_space<vmem>>) attributes {dimension_semantics = [#tpu.dimension_semantics<parallel>], iteration_bounds = array<i64: 2>, scalar_prefetch = 0 : i64, scratch_operands = 2 : i64, tpu.core_type = #tpu.core_type<tc>, window_params = [{transform_indices = @transform_0, window_bounds = array<i64: 1, 4, 16, 16>}, {pipeline_mode = #tpu.pipeline_mode<synchronous>, transform_indices = @transform_1, window_bounds = array<i64: 3, 64, 128>}, {pipeline_mode = #tpu.pipeline_mode<synchronous>, transform_indices = @transform_2, window_bounds = array<i64: 1, 128>}, {pipeline_mode = #tpu.pipeline_mode<synchronous>, transform_indices = @transform_3, window_bounds = array<i64: 3, 128, 128>}, {pipeline_mode = #tpu.pipeline_mode<synchronous>, transform_indices = @transform_4, window_bounds = array<i64: 1, 128>}, {transform_indices = @transform_5, window_bounds = array<i64: 1, 8, 16, 16>}, {transform_indices = @transform_6, window_bounds = array<i64: 1, 8, 16, 16>}]} {
    %cst = arith.constant 0.000000e+00 : f32
    %0 = vector.broadcast %cst : f32 to vector<4x18x16xf32>
    %c0 = arith.constant 0 : index
    %c0_0 = arith.constant 0 : index
    %c0_1 = arith.constant 0 : index
    %1 = vector.load %arg8[%c0, %c0_0, %c0_1] : memref<4x18x16xf32, #tpu.memory_space<vmem>>, vector<4x18x16xf32>
    tpu.vector_store %arg8[%c0, %c0_0, %c0_1], %0 {strides = array<i32>} : memref<4x18x16xf32, #tpu.memory_space<vmem>>, vector<4x18x16xf32>,
    %c0_2 = arith.constant 0 : index
    %c0_3 = arith.constant 0 : index
    %c0_4 = arith.constant 0 : index
    %c0_5 = arith.constant 0 : index
    %2 = vector.load %arg1[%c0_2, %c0_3, %c0_4, %c0_5] : memref<1x4x16x16xf32, #tpu.memory_space<vmem>>, vector<1x4x16x16xf32>
    %3 = vector.shape_cast %2 : vector<1x4x16x16xf32> to vector<4x16x16xf32>
    %c0_6 = arith.constant 0 : index
    %c1 = arith.constant 1 : index
    %c0_7 = arith.constant 0 : index
    %4 = vector.load %arg8[%c0_6, %c1, %c0_7] : memref<4x18x16xf32, #tpu.memory_space<vmem>>, vector<4x16x16xf32>
    tpu.vector_store %arg8[%c0_6, %c1, %c0_7], %3 {strides = array<i32>} : memref<4x18x16xf32, #tpu.memory_space<vmem>>, vector<4x16x16xf32>,
    %cst_8 = arith.constant 0.000000e+00 : f32
    %5 = vector.broadcast %cst_8 : f32 to vector<16x128xf32>
    %c0_9 = arith.constant 0 : index
    %c0_10 = arith.constant 0 : index
    %c0_11 = arith.constant 0 : index
    %6 = vector.load %arg8[%c0_9, %c0_10, %c0_11] : memref<4x18x16xf32, #tpu.memory_space<vmem>>, vector<1x16x16xf32>
    %7 = vector.shape_cast %6 : vector<1x16x16xf32> to vector<16x16xf32>
    %c0_12 = arith.constant 0 : index
    %c0_13 = arith.constant 0 : index
    %c0_14 = arith.constant 0 : index
    %8 = vector.load %arg2[%c0_12, %c0_13, %c0_14] : memref<3x64x128xf32, #tpu.memory_space<vmem>>, vector<1x16x128xf32>
    %9 = vector.shape_cast %8 : vector<1x16x128xf32> to vector<16x128xf32>
    %cst_15 = arith.constant dense<0.000000e+00> : vector<16x128xf32>
    %10 = tpu.matmul %7, %9, %cst_15 {dimension_numbers = #tpu.dot_dimension_numbers<[1], [0], [0], [1], [0, 0, 1, 1], [], []>} : vector<16x16xf32>, vector<16x128xf32>, vector<16x128xf32> -> vector<16x128xf32>
    %11 = arith.addf %5, %10 : vector<16x128xf32>
    %c1_16 = arith.constant 1 : index
    %c0_17 = arith.constant 0 : index
    %c0_18 = arith.constant 0 : index
    %12 = vector.load %arg8[%c1_16, %c0_17, %c0_18] : memref<4x18x16xf32, #tpu.memory_space<vmem>>, vector<1x16x16xf32>
    %13 = vector.shape_cast %12 : vector<1x16x16xf32> to vector<16x16xf32>
    %c0_19 = arith.constant 0 : index
    %c16 = arith.constant 16 : index
    %c0_20 = arith.constant 0 : index
    %14 = vector.load %arg2[%c0_19, %c16, %c0_20] : memref<3x64x128xf32, #tpu.memory_space<vmem>>, vector<1x16x128xf32>
    %15 = vector.shape_cast %14 : vector<1x16x128xf32> to vector<16x128xf32>
    %cst_21 = arith.constant dense<0.000000e+00> : vector<16x128xf32>
    %16 = tpu.matmul %13, %15, %cst_21 {dimension_numbers = #tpu.dot_dimension_numbers<[1], [0], [0], [1], [0, 0, 1, 1], [], []>} : vector<16x16xf32>, vector<16x128xf32>, vector<16x128xf32> -> vector<16x128xf32>
    %17 = arith.addf %11, %16 : vector<16x128xf32>
    %c2 = arith.constant 2 : index
    %c0_22 = arith.constant 0 : index
    %c0_23 = arith.constant 0 : index
    %18 = vector.load %arg8[%c2, %c0_22, %c0_23] : memref<4x18x16xf32, #tpu.memory_space<vmem>>, vector<1x16x16xf32>
    %19 = vector.shape_cast %18 : vector<1x16x16xf32> to vector<16x16xf32>
    %c0_24 = arith.constant 0 : index
    %c32 = arith.constant 32 : index
    %c0_25 = arith.constant 0 : index
    %20 = vector.load %arg2[%c0_24, %c32, %c0_25] : memref<3x64x128xf32, #tpu.memory_space<vmem>>, vector<1x16x128xf32>
    %21 = vector.shape_cast %20 : vector<1x16x128xf32> to vector<16x128xf32>
    %cst_26 = arith.constant dense<0.000000e+00> : vector<16x128xf32>
    %22 = tpu.matmul %19, %21, %cst_26 {dimension_numbers = #tpu.dot_dimension_numbers<[1], [0], [0], [1], [0, 0, 1, 1], [], []>} : vector<16x16xf32>, vector<16x128xf32>, vector<16x128xf32> -> vector<16x128xf32>
    %23 = arith.addf %17, %22 : vector<16x128xf32>
    %c3 = arith.constant 3 : index
    %c0_27 = arith.constant 0 : index
    %c0_28 = arith.constant 0 : index
    %24 = vector.load %arg8[%c3, %c0_27, %c0_28] : memref<4x18x16xf32, #tpu.memory_space<vmem>>, vector<1x16x16xf32>
    %25 = vector.shape_cast %24 : vector<1x16x16xf32> to vector<16x16xf32>
    %c0_29 = arith.constant 0 : index
    %c48 = arith.constant 48 : index
    %c0_30 = arith.constant 0 : index
    %26 = vector.load %arg2[%c0_29, %c48, %c0_30] : memref<3x64x128xf32, #tpu.memory_space<vmem>>, vector<1x16x128xf32>
    %27 = vector.shape_cast %26 : vector<1x16x128xf32> to vector<16x128xf32>
    %cst_31 = arith.constant dense<0.000000e+00> : vector<16x128xf32>
    %28 = tpu.matmul %25, %27, %cst_31 {dimension_numbers = #tpu.dot_dimension_numbers<[1], [0], [0], [1], [0, 0, 1, 1], [], []>} : vector<16x16xf32>, vector<16x128xf32>, vector<16x128xf32> -> vector<16x128xf32>
    %29 = arith.addf %23, %28 : vector<16x128xf32>
    %c0_32 = arith.constant 0 : index
    %c1_33 = arith.constant 1 : index
    %c0_34 = arith.constant 0 : index
    %30 = vector.load %arg8[%c0_32, %c1_33, %c0_34] : memref<4x18x16xf32, #tpu.memory_space<vmem>>, vector<1x16x16xf32>
    %31 = vector.shape_cast %30 : vector<1x16x16xf32> to vector<16x16xf32>
    %c1_35 = arith.constant 1 : index
    %c0_36 = arith.constant 0 : index
    %c0_37 = arith.constant 0 : index
    %32 = vector.load %arg2[%c1_35, %c0_36, %c0_37] : memref<3x64x128xf32, #tpu.memory_space<vmem>>, vector<1x16x128xf32>
    %33 = vector.shape_cast %32 : vector<1x16x128xf32> to vector<16x128xf32>
    %cst_38 = arith.constant dense<0.000000e+00> : vector<16x128xf32>
    %34 = tpu.matmul %31, %33, %cst_38 {dimension_numbers = #tpu.dot_dimension_numbers<[1], [0], [0], [1], [0, 0, 1, 1], [], []>} : vector<16x16xf32>, vector<16x128xf32>, vector<16x128xf32> -> vector<16x128xf32>
    %35 = arith.addf %29, %34 : vector<16x128xf32>
    %c1_39 = arith.constant 1 : index
    %c1_40 = arith.constant 1 : index
    %c0_41 = arith.constant 0 : index
    %36 = vector.load %arg8[%c1_39, %c1_40, %c0_41] : memref<4x18x16xf32, #tpu.memory_space<vmem>>, vector<1x16x16xf32>
    %37 = vector.shape_cast %36 : vector<1x16x16xf32> to vector<16x16xf32>
    %c1_42 = arith.constant 1 : index
    %c16_43 = arith.constant 16 : index
    %c0_44 = arith.constant 0 : index
    %38 = vector.load %arg2[%c1_42, %c16_43, %c0_44] : memref<3x64x128xf32, #tpu.memory_space<vmem>>, vector<1x16x128xf32>
    %39 = vector.shape_cast %38 : vector<1x16x128xf32> to vector<16x128xf32>
    %cst_45 = arith.constant dense<0.000000e+00> : vector<16x128xf32>
    %40 = tpu.matmul %37, %39, %cst_45 {dimension_numbers = #tpu.dot_dimension_numbers<[1], [0], [0], [1], [0, 0, 1, 1], [], []>} : vector<16x16xf32>, vector<16x128xf32>, vector<16x128xf32> -> vector<16x128xf32>
    %41 = arith.addf %35, %40 : vector<16x128xf32>
    %c2_46 = arith.constant 2 : index
    %c1_47 = arith.constant 1 : index
    %c0_48 = arith.constant 0 : index
    %42 = vector.load %arg8[%c2_46, %c1_47, %c0_48] : memref<4x18x16xf32, #tpu.memory_space<vmem>>, vector<1x16x16xf32>
    %43 = vector.shape_cast %42 : vector<1x16x16xf32> to vector<16x16xf32>
    %c1_49 = arith.constant 1 : index
    %c32_50 = arith.constant 32 : index
    %c0_51 = arith.constant 0 : index
    %44 = vector.load %arg2[%c1_49, %c32_50, %c0_51] : memref<3x64x128xf32, #tpu.memory_space<vmem>>, vector<1x16x128xf32>
    %45 = vector.shape_cast %44 : vector<1x16x128xf32> to vector<16x128xf32>
    %cst_52 = arith.constant dense<0.000000e+00> : vector<16x128xf32>
    %46 = tpu.matmul %43, %45, %cst_52 {dimension_numbers = #tpu.dot_dimension_numbers<[1], [0], [0], [1], [0, 0, 1, 1], [], []>} : vector<16x16xf32>, vector<16x128xf32>, vector<16x128xf32> -> vector<16x128xf32>
    %47 = arith.addf %41, %46 : vector<16x128xf32>
    %c3_53 = arith.constant 3 : index
    %c1_54 = arith.constant 1 : index
    %c0_55 = arith.constant 0 : index
    %48 = vector.load %arg8[%c3_53, %c1_54, %c0_55] : memref<4x18x16xf32, #tpu.memory_space<vmem>>, vector<1x16x16xf32>
    %49 = vector.shape_cast %48 : vector<1x16x16xf32> to vector<16x16xf32>
    %c1_56 = arith.constant 1 : index
    %c48_57 = arith.constant 48 : index
    %c0_58 = arith.constant 0 : index
    %50 = vector.load %arg2[%c1_56, %c48_57, %c0_58] : memref<3x64x128xf32, #tpu.memory_space<vmem>>, vector<1x16x128xf32>
    %51 = vector.shape_cast %50 : vector<1x16x128xf32> to vector<16x128xf32>
    %cst_59 = arith.constant dense<0.000000e+00> : vector<16x128xf32>
    %52 = tpu.matmul %49, %51, %cst_59 {dimension_numbers = #tpu.dot_dimension_numbers<[1], [0], [0], [1], [0, 0, 1, 1], [], []>} : vector<16x16xf32>, vector<16x128xf32>, vector<16x128xf32> -> vector<16x128xf32>
    %53 = arith.addf %47, %52 : vector<16x128xf32>
    %c0_60 = arith.constant 0 : index
    %c2_61 = arith.constant 2 : index
    %c0_62 = arith.constant 0 : index
    %54 = vector.load %arg8[%c0_60, %c2_61, %c0_62] : memref<4x18x16xf32, #tpu.memory_space<vmem>>, vector<1x16x16xf32>
    %55 = vector.shape_cast %54 : vector<1x16x16xf32> to vector<16x16xf32>
    %c2_63 = arith.constant 2 : index
    %c0_64 = arith.constant 0 : index
    %c0_65 = arith.constant 0 : index
    %56 = vector.load %arg2[%c2_63, %c0_64, %c0_65] : memref<3x64x128xf32, #tpu.memory_space<vmem>>, vector<1x16x128xf32>
    %57 = vector.shape_cast %56 : vector<1x16x128xf32> to vector<16x128xf32>
    %cst_66 = arith.constant dense<0.000000e+00> : vector<16x128xf32>
    %58 = tpu.matmul %55, %57, %cst_66 {dimension_numbers = #tpu.dot_dimension_numbers<[1], [0], [0], [1], [0, 0, 1, 1], [], []>} : vector<16x16xf32>, vector<16x128xf32>, vector<16x128xf32> -> vector<16x128xf32>
    %59 = arith.addf %53, %58 : vector<16x128xf32>
    %c1_67 = arith.constant 1 : index
    %c2_68 = arith.constant 2 : index
    %c0_69 = arith.constant 0 : index
    %60 = vector.load %arg8[%c1_67, %c2_68, %c0_69] : memref<4x18x16xf32, #tpu.memory_space<vmem>>, vector<1x16x16xf32>
    %61 = vector.shape_cast %60 : vector<1x16x16xf32> to vector<16x16xf32>
    %c2_70 = arith.constant 2 : index
    %c16_71 = arith.constant 16 : index
    %c0_72 = arith.constant 0 : index
    %62 = vector.load %arg2[%c2_70, %c16_71, %c0_72] : memref<3x64x128xf32, #tpu.memory_space<vmem>>, vector<1x16x128xf32>
    %63 = vector.shape_cast %62 : vector<1x16x128xf32> to vector<16x128xf32>
    %cst_73 = arith.constant dense<0.000000e+00> : vector<16x128xf32>
    %64 = tpu.matmul %61, %63, %cst_73 {dimension_numbers = #tpu.dot_dimension_numbers<[1], [0], [0], [1], [0, 0, 1, 1], [], []>} : vector<16x16xf32>, vector<16x128xf32>, vector<16x128xf32> -> vector<16x128xf32>
    %65 = arith.addf %59, %64 : vector<16x128xf32>
    %c2_74 = arith.constant 2 : index
    %c2_75 = arith.constant 2 : index
    %c0_76 = arith.constant 0 : index
    %66 = vector.load %arg8[%c2_74, %c2_75, %c0_76] : memref<4x18x16xf32, #tpu.memory_space<vmem>>, vector<1x16x16xf32>
    %67 = vector.shape_cast %66 : vector<1x16x16xf32> to vector<16x16xf32>
    %c2_77 = arith.constant 2 : index
    %c32_78 = arith.constant 32 : index
    %c0_79 = arith.constant 0 : index
    %68 = vector.load %arg2[%c2_77, %c32_78, %c0_79] : memref<3x64x128xf32, #tpu.memory_space<vmem>>, vector<1x16x128xf32>
    %69 = vector.shape_cast %68 : vector<1x16x128xf32> to vector<16x128xf32>
    %cst_80 = arith.constant dense<0.000000e+00> : vector<16x128xf32>
    %70 = tpu.matmul %67, %69, %cst_80 {dimension_numbers = #tpu.dot_dimension_numbers<[1], [0], [0], [1], [0, 0, 1, 1], [], []>} : vector<16x16xf32>, vector<16x128xf32>, vector<16x128xf32> -> vector<16x128xf32>
    %71 = arith.addf %65, %70 : vector<16x128xf32>
    %c3_81 = arith.constant 3 : index
    %c2_82 = arith.constant 2 : index
    %c0_83 = arith.constant 0 : index
    %72 = vector.load %arg8[%c3_81, %c2_82, %c0_83] : memref<4x18x16xf32, #tpu.memory_space<vmem>>, vector<1x16x16xf32>
    %73 = vector.shape_cast %72 : vector<1x16x16xf32> to vector<16x16xf32>
    %c2_84 = arith.constant 2 : index
    %c48_85 = arith.constant 48 : index
    %c0_86 = arith.constant 0 : index
    %74 = vector.load %arg2[%c2_84, %c48_85, %c0_86] : memref<3x64x128xf32, #tpu.memory_space<vmem>>, vector<1x16x128xf32>
    %75 = vector.shape_cast %74 : vector<1x16x128xf32> to vector<16x128xf32>
    %cst_87 = arith.constant dense<0.000000e+00> : vector<16x128xf32>
    %76 = tpu.matmul %73, %75, %cst_87 {dimension_numbers = #tpu.dot_dimension_numbers<[1], [0], [0], [1], [0, 0, 1, 1], [], []>} : vector<16x16xf32>, vector<16x128xf32>, vector<16x128xf32> -> vector<16x128xf32>
    %77 = arith.addf %71, %76 : vector<16x128xf32>
    %c0_88 = arith.constant 0 : index
    %c0_89 = arith.constant 0 : index
    %78 = vector.load %arg3[%c0_88, %c0_89] : memref<1x128xf32, #tpu.memory_space<vmem>>, vector<1x128xf32>
    %79 = vector.broadcast %78 : vector<1x128xf32> to vector<16x128xf32>
    %80 = arith.addf %77, %79 : vector<16x128xf32>
    %cst_90 = arith.constant 0.000000e+00 : f32
    %81 = vector.broadcast %cst_90 : f32 to vector<16x128xf32>
    %82 = arith.maximumf %80, %81 : vector<16x128xf32>
    %cst_91 = arith.constant 0.000000e+00 : f32
    %83 = vector.broadcast %cst_91 : f32 to vector<18x128xf32>
    %c0_92 = arith.constant 0 : index
    %c0_93 = arith.constant 0 : index
    %84 = vector.load %arg9[%c0_92, %c0_93] : memref<18x128xf32, #tpu.memory_space<vmem>>, vector<18x128xf32>
    tpu.vector_store %arg9[%c0_92, %c0_93], %83 {strides = array<i32>} : memref<18x128xf32, #tpu.memory_space<vmem>>, vector<18x128xf32>,
    %c1_94 = arith.constant 1 : index
    %c0_95 = arith.constant 0 : index
    %85 = vector.load %arg9[%c1_94, %c0_95] : memref<18x128xf32, #tpu.memory_space<vmem>>, vector<16x128xf32>
    tpu.vector_store %arg9[%c1_94, %c0_95], %82 {strides = array<i32>} : memref<18x128xf32, #tpu.memory_space<vmem>>, vector<16x128xf32>,
    %cst_96 = arith.constant 0.000000e+00 : f32
    %86 = vector.broadcast %cst_96 : f32 to vector<16x128xf32>
    %c0_97 = arith.constant 0 : index
    %c0_98 = arith.constant 0 : index
    %87 = vector.load %arg9[%c0_97, %c0_98] : memref<18x128xf32, #tpu.memory_space<vmem>>, vector<16x128xf32>
    %c0_99 = arith.constant 0 : index
    %c0_100 = arith.constant 0 : index
    %c0_101 = arith.constant 0 : index
    %88 = vector.load %arg4[%c0_99, %c0_100, %c0_101] : memref<3x128x128xf32, #tpu.memory_space<vmem>>, vector<1x128x128xf32>
    %89 = vector.shape_cast %88 : vector<1x128x128xf32> to vector<128x128xf32>
    %cst_102 = arith.constant dense<0.000000e+00> : vector<16x128xf32>
    %90 = tpu.matmul %87, %89, %cst_102 {dimension_numbers = #tpu.dot_dimension_numbers<[1], [0], [0], [1], [0, 0, 1, 1], [], []>} : vector<16x128xf32>, vector<128x128xf32>, vector<16x128xf32> -> vector<16x128xf32>
    %91 = arith.addf %86, %90 : vector<16x128xf32>
    %c1_103 = arith.constant 1 : index
    %c0_104 = arith.constant 0 : index
    %92 = vector.load %arg9[%c1_103, %c0_104] : memref<18x128xf32, #tpu.memory_space<vmem>>, vector<16x128xf32>
    %c1_105 = arith.constant 1 : index
    %c0_106 = arith.constant 0 : index
    %c0_107 = arith.constant 0 : index
    %93 = vector.load %arg4[%c1_105, %c0_106, %c0_107] : memref<3x128x128xf32, #tpu.memory_space<vmem>>, vector<1x128x128xf32>
    %94 = vector.shape_cast %93 : vector<1x128x128xf32> to vector<128x128xf32>
    %cst_108 = arith.constant dense<0.000000e+00> : vector<16x128xf32>
    %95 = tpu.matmul %92, %94, %cst_108 {dimension_numbers = #tpu.dot_dimension_numbers<[1], [0], [0], [1], [0, 0, 1, 1], [], []>} : vector<16x128xf32>, vector<128x128xf32>, vector<16x128xf32> -> vector<16x128xf32>
    %96 = arith.addf %91, %95 : vector<16x128xf32>
    %c2_109 = arith.constant 2 : index
    %c0_110 = arith.constant 0 : index
    %97 = vector.load %arg9[%c2_109, %c0_110] : memref<18x128xf32, #tpu.memory_space<vmem>>, vector<16x128xf32>
    %c2_111 = arith.constant 2 : index
    %c0_112 = arith.constant 0 : index
    %c0_113 = arith.constant 0 : index
    %98 = vector.load %arg4[%c2_111, %c0_112, %c0_113] : memref<3x128x128xf32, #tpu.memory_space<vmem>>, vector<1x128x128xf32>
    %99 = vector.shape_cast %98 : vector<1x128x128xf32> to vector<128x128xf32>
    %cst_114 = arith.constant dense<0.000000e+00> : vector<16x128xf32>
    %100 = tpu.matmul %97, %99, %cst_114 {dimension_numbers = #tpu.dot_dimension_numbers<[1], [0], [0], [1], [0, 0, 1, 1], [], []>} : vector<16x128xf32>, vector<128x128xf32>, vector<16x128xf32> -> vector<16x128xf32>
    %101 = arith.addf %96, %100 : vector<16x128xf32>
    %c0_115 = arith.constant 0 : index
    %c0_116 = arith.constant 0 : index
    %102 = vector.load %arg5[%c0_115, %c0_116] : memref<1x128xf32, #tpu.memory_space<vmem>>, vector<1x128xf32>
    %103 = vector.broadcast %102 : vector<1x128xf32> to vector<16x128xf32>
    %104 = arith.addf %101, %103 : vector<16x128xf32>
    %cst_117 = arith.constant 0.000000e+00 : f32
    %105 = vector.broadcast %cst_117 : f32 to vector<16x128xf32>
    %106 = arith.maximumf %104, %105 : vector<16x128xf32>
    %107 = vector.extract_strided_slice %82 {offsets = [0, 0], sizes = [16, 16], strides = [1, 1]} : vector<16x128xf32> to vector<16x16xf32>
    %c0_118 = arith.constant 0 : index
    %c0_119 = arith.constant 0 : index
    %c0_120 = arith.constant 0 : index
    %c0_121 = arith.constant 0 : index
    %108 = vector.load %arg6[%c0_118, %c0_119, %c0_120, %c0_121] : memref<1x8x16x16xf32, #tpu.memory_space<vmem>>, vector<1x1x16x16xf32>
    %109 = vector.shape_cast %108 : vector<1x1x16x16xf32> to vector<16x16xf32>
    %110 = vector.shape_cast %107 : vector<16x16xf32> to vector<1x1x16x16xf32>
    tpu.vector_store %arg6[%c0_118, %c0_119, %c0_120, %c0_121], %110 {strides = array<i32>} : memref<1x8x16x16xf32, #tpu.memory_space<vmem>>, vector<1x1x16x16xf32>,
    %111 = vector.extract_strided_slice %106 {offsets = [0, 0], sizes = [16, 16], strides = [1, 1]} : vector<16x128xf32> to vector<16x16xf32>
    %c0_122 = arith.constant 0 : index
    %c0_123 = arith.constant 0 : index
    %c0_124 = arith.constant 0 : index
    %c0_125 = arith.constant 0 : index
    %112 = vector.load %arg7[%c0_122, %c0_123, %c0_124, %c0_125] : memref<1x8x16x16xf32, #tpu.memory_space<vmem>>, vector<1x1x16x16xf32>
    %113 = vector.shape_cast %112 : vector<1x1x16x16xf32> to vector<16x16xf32>
    %114 = vector.shape_cast %111 : vector<16x16xf32> to vector<1x1x16x16xf32>
    tpu.vector_store %arg7[%c0_122, %c0_123, %c0_124, %c0_125], %114 {strides = array<i32>} : memref<1x8x16x16xf32, #tpu.memory_space<vmem>>, vector<1x1x16x16xf32>,
    %115 = vector.extract_strided_slice %82 {offsets = [0, 16], sizes = [16, 16], strides = [1, 1]} : vector<16x128xf32> to vector<16x16xf32>
    %c0_126 = arith.constant 0 : index
    %c1_127 = arith.constant 1 : index
    %c0_128 = arith.constant 0 : index
    %c0_129 = arith.constant 0 : index
    %116 = vector.load %arg6[%c0_126, %c1_127, %c0_128, %c0_129] : memref<1x8x16x16xf32, #tpu.memory_space<vmem>>, vector<1x1x16x16xf32>
    %117 = vector.shape_cast %116 : vector<1x1x16x16xf32> to vector<16x16xf32>
    %118 = vector.shape_cast %115 : vector<16x16xf32> to vector<1x1x16x16xf32>
    tpu.vector_store %arg6[%c0_126, %c1_127, %c0_128, %c0_129], %118 {strides = array<i32>} : memref<1x8x16x16xf32, #tpu.memory_space<vmem>>, vector<1x1x16x16xf32>,
    %119 = vector.extract_strided_slice %106 {offsets = [0, 16], sizes = [16, 16], strides = [1, 1]} : vector<16x128xf32> to vector<16x16xf32>
    %c0_130 = arith.constant 0 : index
    %c1_131 = arith.constant 1 : index
    %c0_132 = arith.constant 0 : index
    %c0_133 = arith.constant 0 : index
    %120 = vector.load %arg7[%c0_130, %c1_131, %c0_132, %c0_133] : memref<1x8x16x16xf32, #tpu.memory_space<vmem>>, vector<1x1x16x16xf32>
    %121 = vector.shape_cast %120 : vector<1x1x16x16xf32> to vector<16x16xf32>
    %122 = vector.shape_cast %119 : vector<16x16xf32> to vector<1x1x16x16xf32>
    tpu.vector_store %arg7[%c0_130, %c1_131, %c0_132, %c0_133], %122 {strides = array<i32>} : memref<1x8x16x16xf32, #tpu.memory_space<vmem>>, vector<1x1x16x16xf32>,
    %123 = vector.extract_strided_slice %82 {offsets = [0, 32], sizes = [16, 16], strides = [1, 1]} : vector<16x128xf32> to vector<16x16xf32>
    %c0_134 = arith.constant 0 : index
    %c2_135 = arith.constant 2 : index
    %c0_136 = arith.constant 0 : index
    %c0_137 = arith.constant 0 : index
    %124 = vector.load %arg6[%c0_134, %c2_135, %c0_136, %c0_137] : memref<1x8x16x16xf32, #tpu.memory_space<vmem>>, vector<1x1x16x16xf32>
    %125 = vector.shape_cast %124 : vector<1x1x16x16xf32> to vector<16x16xf32>
    %126 = vector.shape_cast %123 : vector<16x16xf32> to vector<1x1x16x16xf32>
    tpu.vector_store %arg6[%c0_134, %c2_135, %c0_136, %c0_137], %126 {strides = array<i32>} : memref<1x8x16x16xf32, #tpu.memory_space<vmem>>, vector<1x1x16x16xf32>,
    %127 = vector.extract_strided_slice %106 {offsets = [0, 32], sizes = [16, 16], strides = [1, 1]} : vector<16x128xf32> to vector<16x16xf32>
    %c0_138 = arith.constant 0 : index
    %c2_139 = arith.constant 2 : index
    %c0_140 = arith.constant 0 : index
    %c0_141 = arith.constant 0 : index
    %128 = vector.load %arg7[%c0_138, %c2_139, %c0_140, %c0_141] : memref<1x8x16x16xf32, #tpu.memory_space<vmem>>, vector<1x1x16x16xf32>
    %129 = vector.shape_cast %128 : vector<1x1x16x16xf32> to vector<16x16xf32>
    %130 = vector.shape_cast %127 : vector<16x16xf32> to vector<1x1x16x16xf32>
    tpu.vector_store %arg7[%c0_138, %c2_139, %c0_140, %c0_141], %130 {strides = array<i32>} : memref<1x8x16x16xf32, #tpu.memory_space<vmem>>, vector<1x1x16x16xf32>,
    %131 = vector.extract_strided_slice %82 {offsets = [0, 48], sizes = [16, 16], strides = [1, 1]} : vector<16x128xf32> to vector<16x16xf32>
    %c0_142 = arith.constant 0 : index
    %c3_143 = arith.constant 3 : index
    %c0_144 = arith.constant 0 : index
    %c0_145 = arith.constant 0 : index
    %132 = vector.load %arg6[%c0_142, %c3_143, %c0_144, %c0_145] : memref<1x8x16x16xf32, #tpu.memory_space<vmem>>, vector<1x1x16x16xf32>
    %133 = vector.shape_cast %132 : vector<1x1x16x16xf32> to vector<16x16xf32>
    %134 = vector.shape_cast %131 : vector<16x16xf32> to vector<1x1x16x16xf32>
    tpu.vector_store %arg6[%c0_142, %c3_143, %c0_144, %c0_145], %134 {strides = array<i32>} : memref<1x8x16x16xf32, #tpu.memory_space<vmem>>, vector<1x1x16x16xf32>,
    %135 = vector.extract_strided_slice %106 {offsets = [0, 48], sizes = [16, 16], strides = [1, 1]} : vector<16x128xf32> to vector<16x16xf32>
    %c0_146 = arith.constant 0 : index
    %c3_147 = arith.constant 3 : index
    %c0_148 = arith.constant 0 : index
    %c0_149 = arith.constant 0 : index
    %136 = vector.load %arg7[%c0_146, %c3_147, %c0_148, %c0_149] : memref<1x8x16x16xf32, #tpu.memory_space<vmem>>, vector<1x1x16x16xf32>
    %137 = vector.shape_cast %136 : vector<1x1x16x16xf32> to vector<16x16xf32>
    %138 = vector.shape_cast %135 : vector<16x16xf32> to vector<1x1x16x16xf32>
    tpu.vector_store %arg7[%c0_146, %c3_147, %c0_148, %c0_149], %138 {strides = array<i32>} : memref<1x8x16x16xf32, #tpu.memory_space<vmem>>, vector<1x1x16x16xf32>,
    %139 = vector.extract_strided_slice %82 {offsets = [0, 64], sizes = [16, 16], strides = [1, 1]} : vector<16x128xf32> to vector<16x16xf32>
    %c0_150 = arith.constant 0 : index
    %c4 = arith.constant 4 : index
    %c0_151 = arith.constant 0 : index
    %c0_152 = arith.constant 0 : index
    %140 = vector.load %arg6[%c0_150, %c4, %c0_151, %c0_152] : memref<1x8x16x16xf32, #tpu.memory_space<vmem>>, vector<1x1x16x16xf32>
    %141 = vector.shape_cast %140 : vector<1x1x16x16xf32> to vector<16x16xf32>
    %142 = vector.shape_cast %139 : vector<16x16xf32> to vector<1x1x16x16xf32>
    tpu.vector_store %arg6[%c0_150, %c4, %c0_151, %c0_152], %142 {strides = array<i32>} : memref<1x8x16x16xf32, #tpu.memory_space<vmem>>, vector<1x1x16x16xf32>,
    %143 = vector.extract_strided_slice %106 {offsets = [0, 64], sizes = [16, 16], strides = [1, 1]} : vector<16x128xf32> to vector<16x16xf32>
    %c0_153 = arith.constant 0 : index
    %c4_154 = arith.constant 4 : index
    %c0_155 = arith.constant 0 : index
    %c0_156 = arith.constant 0 : index
    %144 = vector.load %arg7[%c0_153, %c4_154, %c0_155, %c0_156] : memref<1x8x16x16xf32, #tpu.memory_space<vmem>>, vector<1x1x16x16xf32>
    %145 = vector.shape_cast %144 : vector<1x1x16x16xf32> to vector<16x16xf32>
    %146 = vector.shape_cast %143 : vector<16x16xf32> to vector<1x1x16x16xf32>
    tpu.vector_store %arg7[%c0_153, %c4_154, %c0_155, %c0_156], %146 {strides = array<i32>} : memref<1x8x16x16xf32, #tpu.memory_space<vmem>>, vector<1x1x16x16xf32>,
    %147 = vector.extract_strided_slice %82 {offsets = [0, 80], sizes = [16, 16], strides = [1, 1]} : vector<16x128xf32> to vector<16x16xf32>
    %c0_157 = arith.constant 0 : index
    %c5 = arith.constant 5 : index
    %c0_158 = arith.constant 0 : index
    %c0_159 = arith.constant 0 : index
    %148 = vector.load %arg6[%c0_157, %c5, %c0_158, %c0_159] : memref<1x8x16x16xf32, #tpu.memory_space<vmem>>, vector<1x1x16x16xf32>
    %149 = vector.shape_cast %148 : vector<1x1x16x16xf32> to vector<16x16xf32>
    %150 = vector.shape_cast %147 : vector<16x16xf32> to vector<1x1x16x16xf32>
    tpu.vector_store %arg6[%c0_157, %c5, %c0_158, %c0_159], %150 {strides = array<i32>} : memref<1x8x16x16xf32, #tpu.memory_space<vmem>>, vector<1x1x16x16xf32>,
    %151 = vector.extract_strided_slice %106 {offsets = [0, 80], sizes = [16, 16], strides = [1, 1]} : vector<16x128xf32> to vector<16x16xf32>
    %c0_160 = arith.constant 0 : index
    %c5_161 = arith.constant 5 : index
    %c0_162 = arith.constant 0 : index
    %c0_163 = arith.constant 0 : index
    %152 = vector.load %arg7[%c0_160, %c5_161, %c0_162, %c0_163] : memref<1x8x16x16xf32, #tpu.memory_space<vmem>>, vector<1x1x16x16xf32>
    %153 = vector.shape_cast %152 : vector<1x1x16x16xf32> to vector<16x16xf32>
    %154 = vector.shape_cast %151 : vector<16x16xf32> to vector<1x1x16x16xf32>
    tpu.vector_store %arg7[%c0_160, %c5_161, %c0_162, %c0_163], %154 {strides = array<i32>} : memref<1x8x16x16xf32, #tpu.memory_space<vmem>>, vector<1x1x16x16xf32>,
    %155 = vector.extract_strided_slice %82 {offsets = [0, 96], sizes = [16, 16], strides = [1, 1]} : vector<16x128xf32> to vector<16x16xf32>
    %c0_164 = arith.constant 0 : index
    %c6 = arith.constant 6 : index
    %c0_165 = arith.constant 0 : index
    %c0_166 = arith.constant 0 : index
    %156 = vector.load %arg6[%c0_164, %c6, %c0_165, %c0_166] : memref<1x8x16x16xf32, #tpu.memory_space<vmem>>, vector<1x1x16x16xf32>
    %157 = vector.shape_cast %156 : vector<1x1x16x16xf32> to vector<16x16xf32>
    %158 = vector.shape_cast %155 : vector<16x16xf32> to vector<1x1x16x16xf32>
    tpu.vector_store %arg6[%c0_164, %c6, %c0_165, %c0_166], %158 {strides = array<i32>} : memref<1x8x16x16xf32, #tpu.memory_space<vmem>>, vector<1x1x16x16xf32>,
    %159 = vector.extract_strided_slice %106 {offsets = [0, 96], sizes = [16, 16], strides = [1, 1]} : vector<16x128xf32> to vector<16x16xf32>
    %c0_167 = arith.constant 0 : index
    %c6_168 = arith.constant 6 : index
    %c0_169 = arith.constant 0 : index
    %c0_170 = arith.constant 0 : index
    %160 = vector.load %arg7[%c0_167, %c6_168, %c0_169, %c0_170] : memref<1x8x16x16xf32, #tpu.memory_space<vmem>>, vector<1x1x16x16xf32>
    %161 = vector.shape_cast %160 : vector<1x1x16x16xf32> to vector<16x16xf32>
    %162 = vector.shape_cast %159 : vector<16x16xf32> to vector<1x1x16x16xf32>
    tpu.vector_store %arg7[%c0_167, %c6_168, %c0_169, %c0_170], %162 {strides = array<i32>} : memref<1x8x16x16xf32, #tpu.memory_space<vmem>>, vector<1x1x16x16xf32>,
    %163 = vector.extract_strided_slice %82 {offsets = [0, 112], sizes = [16, 16], strides = [1, 1]} : vector<16x128xf32> to vector<16x16xf32>
    %c0_171 = arith.constant 0 : index
    %c7 = arith.constant 7 : index
    %c0_172 = arith.constant 0 : index
    %c0_173 = arith.constant 0 : index
    %164 = vector.load %arg6[%c0_171, %c7, %c0_172, %c0_173] : memref<1x8x16x16xf32, #tpu.memory_space<vmem>>, vector<1x1x16x16xf32>
    %165 = vector.shape_cast %164 : vector<1x1x16x16xf32> to vector<16x16xf32>
    %166 = vector.shape_cast %163 : vector<16x16xf32> to vector<1x1x16x16xf32>
    tpu.vector_store %arg6[%c0_171, %c7, %c0_172, %c0_173], %166 {strides = array<i32>} : memref<1x8x16x16xf32, #tpu.memory_space<vmem>>, vector<1x1x16x16xf32>,
    %167 = vector.extract_strided_slice %106 {offsets = [0, 112], sizes = [16, 16], strides = [1, 1]} : vector<16x128xf32> to vector<16x16xf32>
    %c0_174 = arith.constant 0 : index
    %c7_175 = arith.constant 7 : index
    %c0_176 = arith.constant 0 : index
    %c0_177 = arith.constant 0 : index
    %168 = vector.load %arg7[%c0_174, %c7_175, %c0_176, %c0_177] : memref<1x8x16x16xf32, #tpu.memory_space<vmem>>, vector<1x1x16x16xf32>
    %169 = vector.shape_cast %168 : vector<1x1x16x16xf32> to vector<16x16xf32>
    %170 = vector.shape_cast %167 : vector<16x16xf32> to vector<1x1x16x16xf32>
    tpu.vector_store %arg7[%c0_174, %c7_175, %c0_176, %c0_177], %170 {strides = array<i32>} : memref<1x8x16x16xf32, #tpu.memory_space<vmem>>, vector<1x1x16x16xf32>,
    return
  }
  func.func @transform_0(%arg0: i32) -> (i32, i32, i32, i32) {
    %c0_i32 = arith.constant 0 : i32
    %c0_i32_0 = arith.constant 0 : i32
    %c0_i32_1 = arith.constant 0 : i32
    %c0_i32_2 = arith.constant 0 : i32
    return %arg0, %c0_i32, %c0_i32_0, %c0_i32_1 : i32, i32, i32, i32
  }
  func.func @transform_1(%arg0: i32) -> (i32, i32, i32) {
    %c0_i32 = arith.constant 0 : i32
    %c0_i32_0 = arith.constant 0 : i32
    %c0_i32_1 = arith.constant 0 : i32
    %c0_i32_2 = arith.constant 0 : i32
    return %c0_i32, %c0_i32_0, %c0_i32_1 : i32, i32, i32
  }
  func.func @transform_2(%arg0: i32) -> (i32, i32) {
    %c0_i32 = arith.constant 0 : i32
    %c0_i32_0 = arith.constant 0 : i32
    %c0_i32_1 = arith.constant 0 : i32
    return %c0_i32, %c0_i32_0 : i32, i32
  }
  func.func @transform_3(%arg0: i32) -> (i32, i32, i32) {
    %c0_i32 = arith.constant 0 : i32
    %c0_i32_0 = arith.constant 0 : i32
    %c0_i32_1 = arith.constant 0 : i32
    %c0_i32_2 = arith.constant 0 : i32
    return %c0_i32, %c0_i32_0, %c0_i32_1 : i32, i32, i32
  }
  func.func @transform_4(%arg0: i32) -> (i32, i32) {
    %c0_i32 = arith.constant 0 : i32
    %c0_i32_0 = arith.constant 0 : i32
    %c0_i32_1 = arith.constant 0 : i32
    return %c0_i32, %c0_i32_0 : i32, i32
  }
  func.func @transform_5(%arg0: i32) -> (i32, i32, i32, i32) {
    %c0_i32 = arith.constant 0 : i32
    %c0_i32_0 = arith.constant 0 : i32
    %c0_i32_1 = arith.constant 0 : i32
    %c0_i32_2 = arith.constant 0 : i32
    return %arg0, %c0_i32, %c0_i32_0, %c0_i32_1 : i32, i32, i32, i32
  }
  func.func @transform_6(%arg0: i32) -> (i32, i32, i32, i32) {
    %c0_i32 = arith.constant 0 : i32
    %c0_i32_0 = arith.constant 0 : i32
    %c0_i32_1 = arith.constant 0 : i32
    %c0_i32_2 = arith.constant 0 : i32
    return %arg0, %c0_i32, %c0_i32_0, %c0_i32_1 : i32, i32, i32, i32
  }
}

</mosaic_0001>

<bundles_post_ra>
// kernel: _lambda_.1
= control target key start
LH: loop header
LB: loop body
LE: loop exit
PB: predicated region body
PF: predicated region fallthrough
CT: control target
= control target key end

     0   :  { %12 = vsyncpa [#allocation5], 0  ;;  %s3301_s0 = inlined_call_operand.hbm [shape: f32[2,4,16,16], index: 0, kind: input, shape index: {}]   ;;  %s3302_s1 = inlined_call_operand.hbm [shape: f32[3,64,128], index: 1, kind: input, shape index: {}]   ;;  %s3303_s2 = inlined_call_operand.vmem [shape: f32[1,128], index: 2, kind: input, shape index: {}]   ;;  %s3304_s3 = inlined_call_operand.hbm [shape: f32[3,128,128], index: 3, kind: input, shape index: {}]   ;;  %s3305_s4 = inlined_call_operand.vmem [shape: f32[1,128], index: 4, kind: input, shape index: {}]   ;;  %s3306_s5 = inlined_call_operand.hbm [shape: f32[2,8,16,16], index: 5, kind: output, shape index: {0}]   ;;  %s3307_s6 = inlined_call_operand.hbm [shape: f32[2,8,16,16], index: 6, kind: output, shape index: {1}]  }
   0x1   :  { %14 = vsyncpa [#allocation5 + $0x1], 0 }
   0x2   :  { %15 = vsyncpa [#allocation8], 0 }
   0x3   :  { %16 = vsyncpa [#allocation6], 0 }
   0x4   :  { %18 = vsyncpa [#allocation6 + $0x1], 0 }
   0x5   :  { %19 = vsyncpa [#allocation12], 0 }
   0x6   :  { %21 = vsyncpa [#allocation12 + $0x1], 0  ;;  %s2854_s21 = smov 0   ;;  %s2856_s22 = smov 0  }
   0x7   :  { %s2858_s23 = smov 0   ;;  %s2860_s24 = smov 0  }
   0x8 LB: > { %s2875_s25 = sadd.s32 4294967295, %s2800_s24   ;;  %s1988_s26 = sadd.s32 4294967294, %s2800_s24   ;;  %s2800_s24 = sphi %s2860_s24, %s3331_s24   ;;  %s2796_s23 = sphi %s2858_s23, %s3330_s23   ;;  %s2792_s22 = sphi %s2856_s22, %s3329_s22   ;;  %s2788_s21 = sphi %s2854_s21, %s3328_s21  }
   0x9   : > { %p47_p0 = scmp.ne.s32.totalorder %s2792_s22, %s2788_s21  ;;  %p3308_p1 = scmp.eq.s32.totalorder %s2875_s25, 0 }
   0xa   : > { %p161_p3 = scmp.eq.s32.totalorder %s1988_s26, 1  ;;  %p1989_p5 = scmp.ge.s32.totalorder %s2800_s24, 1 }
   0xb   : > { %p2884_p4 = por %p3308_p1, %p47_p0  ;;  %p194_p7 = scmp.lt.s32.totalorder %s2800_s24, 3 }
   0xc   : > { %p2889_p6 = por %p161_p3, %p47_p0  ;;  %s2802_s30 = smov [#allocation7]  }
   0xd   : > { %s3313_s27 = scalar_select %p2884_p4, 1, 0 }
   0xe   : > { %s3314_s28 = scalar_select %p2889_p6, 1, 0 }
   0xf   : > { %p2894_p8 = pnand %p1989_p5, %p194_p7  ;;  %s206_s7 = sshll.u32 %s2802_s30, 4  ;;  %s2898_s7 = int_to_ptr.vmem [resolvable:$true] %s206_s7 }
  0x10   : > { %s2803_s9 = smov [#allocation9]   ;;  %s2612_s13 = scalar_lea.hbm %s3302_s1, 3072 }
  0x11   : > { %p2542_p9 = pneg %p2894_p8  ;;  %s222_s10 = sshll.u32 %s2803_s9, 4  ;;  %s2909_s10 = int_to_ptr.vmem [resolvable:$true] %s222_s10 }
  0x12   : > { %p2613_p12 = scmp.ne.s32.totalorder %s3302_s1, %s2612_s13  ;;  %p2619_p5 = scmp.lt.u32.totalorder %s2612_s13, %s3302_s1 }
  0x13   : > { %p2905_p11 = pnand %p2542_p9, %p3308_p1 }
  0x15   : > { %p2614_p13 = pneg %p2905_p11 }
  0x17   : > { %p2615_p0 = pnand %p2614_p13, %p2613_p12 }
  0x19   : > { %p2616_p3 = pneg %p2615_p0 }
  0x1b   : > { %p2621_p7 = pnand %p2619_p5, %p2616_p3 }
  0x1d   : > { %2624 = shalt.err (!%p2621_p7)
}
  0x1e   : > { %s2625_s18 = scalar_lea.vmem %s2898_s7, 3072  ;;  %p2633_p2 = scmp.lt.s32.totalorder %s2898_s7, %s2898_s7 }
  0x1f   : > { %p2626_p9 = scmp.ne.s32.totalorder %s2898_s7, %s2625_s18  ;;  %p2634_p12 = scmp.lt.s32.totalorder %s2625_s18, %s2625_s18 }
  0x21   : > { %p2628_p10 = pnand %p2626_p9, %p2614_p13  ;;  %p2635_p0 = por %p2634_p12, %p2633_p2 }
  0x23   : > { %p2629_p1 = pneg %p2628_p10 }
  0x25   : > { %p2636_p6 = pnand %p2635_p0, %p2629_p1 }
  0x27   : > { %2639 = shalt.err (!%p2636_p6)
}
  0x28   : > { %s2804_s19 = smov 128   ;;  %s2805_s20 = smov 8  }
  0x29   : > { %2545 = dma.hbm_to_vmem [thread:$0]  (!%p2905_p11), %s3302_s1, 3072, %s2898_s7, [#allocation8], %s2804_s19, %s2804_s19, %s2805_s20  }
  0x2a   : > { %s2640_s12 = scalar_lea.hbm %s3304_s3, 6144 }
  0x2b   : > { %p2641_p1 = scmp.ne.s32.totalorder %s3304_s3, %s2640_s12  ;;  %p2647_p10 = scmp.lt.u32.totalorder %s2640_s12, %s3304_s3 }
  0x2d   : > { %p2643_p2 = pnand %p2641_p1, %p2614_p13 }
  0x2f   : > { %p2644_p6 = pneg %p2643_p2 }
  0x31   : > { %p2649_p3 = pnand %p2647_p10, %p2644_p6 }
  0x33   : > { %2652 = shalt.err (!%p2649_p3)
}
  0x34   : > { %s2653_s7 = scalar_lea.vmem %s2909_s10, 6144  ;;  %p2661_p12 = scmp.lt.s32.totalorder %s2909_s10, %s2909_s10 }
  0x35   : > { %p2654_p5 = scmp.ne.s32.totalorder %s2909_s10, %s2653_s7  ;;  %p2662_p0 = scmp.lt.s32.totalorder %s2653_s7, %s2653_s7 }
  0x37   : > { %p2656_p7 = pnand %p2654_p5, %p2614_p13  ;;  %p2663_p1 = por %p2662_p0, %p2661_p12 }
  0x39   : > { %p2657_p9 = pneg %p2656_p7 }
  0x3b   : > { %p2664_p2 = pnand %p2663_p1, %p2657_p9 }
  0x3d   : > { %2667 = shalt.err (!%p2664_p2)
}
  0x3e   : > { %2548 = dma.hbm_to_vmem [thread:$0]  (!%p2905_p11), %s3304_s3, 6144, %s2909_s10, [#allocation8], %s2804_s19, %s2804_s19, %s2805_s20  }
  0x3f   : > { %s2970_s8 = sadd.s32 1, %s2800_s24   ;;  %s34_s26 = sadd.s32 1, %s2796_s23 }
  0x40   : > { %s31_s30 = ssub.s32 %s2800_s24, %s2970_s8  ;;  %p41_p13 = scmp.ne.s32.totalorder %s2796_s23, %s2792_s22 }
  0x41   : > { %p32_p6 = scmp.eq.s32.totalorder %s31_s30, 0  ;;  %p42_p10 = scmp.eq.s32.totalorder %s2800_s24, 0 }
  0x42   : > { %p3317_p3 = scmp.eq.s32.totalorder %s2875_s25, 1  ;;  %p2562_p7 = scmp.lt.s32.totalorder %s2800_s24, 2 }
  0x43   : > { %s2986_s11 = scalar_select %p32_p6, %s2796_s23, %s34_s26  }
  0x44   : > { %p2980_p5 = por %p3317_p3, %p41_p13  ;;  %p43_p9 = por %p42_p10, %p41_p13 }
  0x45   : > { %s239_s12 = sand.u32 1, %s2796_s23   ;;  %s2064_s10 = sshll.u32 %s2800_s24, 10 }
  0x46   : > { %s3318_s9 = scalar_select %p2980_p5, 1, 0 }
  0x47   : > { %s1993_s13 = sshll.u32 %s239_s12, 6  ;;  %s2993_s16 = scalar_lea.hbm %s3301_s0, %s2064_s10 }
  0x48   : > { %s243_s7 = scalar_lea.vmem [#allocation4], %s1993_s13  ;;  %p2997_p11 = pnand %p2562_p7, %p43_p9 }
  0x49   : > { %s250_s17 = sshll.u32 %s243_s7, 4  ;;  %s3001_s26 = scalar_lea.sflag [#allocation5], %s239_s12  ;;  %s2995_s17 = int_to_ptr.vmem [resolvable:$true] %s250_s17 }
  0x4a   : > { %s2668_s30 = scalar_lea.hbm %s2993_s16, 1024  ;;  %p2670_p0 = pneg %p2997_p11 }
  0x4b   : > { %p2669_p12 = scmp.ne.s32.totalorder %s2993_s16, %s2668_s30  ;;  %s2673_s14 = scalar_lea.hbm %s3301_s0, 2048 }
  0x4c   : > { %p2674_p13 = scmp.lt.u32.totalorder %s2993_s16, %s3301_s0  ;;  %p2675_p6 = scmp.lt.u32.totalorder %s2673_s14, %s2668_s30 }
  0x4d   : > { %p2671_p1 = pnand %p2670_p0, %p2669_p12  ;;  %p2677_p3 = scmp.lt.u32.totalorder %s2668_s30, %s2993_s16 }
  0x4e   : > { %p2676_p10 = por %p2675_p6, %p2674_p13 }
  0x4f   : > { %p2672_p2 = pneg %p2671_p1 }
  0x50   : > { %p2678_p7 = por %p2677_p3, %p2676_p10 }
  0x52   : > { %p2679_p9 = pnand %p2678_p7, %p2672_p2 }
  0x54   : > { %2682 = shalt.err (!%p2679_p9)
}
  0x55   : > { %s2683_s12 = scalar_lea.vmem %s2995_s17, 1024  ;;  %s2806_s13 = smov [#allocation4]  }
  0x56   : > { %p2684_p12 = scmp.ne.s32.totalorder %s2995_s17, %s2683_s12  ;;  %s2688_s10 = sshll.u32 %s2806_s13, 4  ;;  %s2689_s10 = int_to_ptr.vmem [resolvable:$false] %s2688_s10 }
  0x57   : > { %s2690_s15 = scalar_lea.vmem %s2689_s10, 2048  ;;  %p2691_p4 = scmp.lt.s32.totalorder %s2995_s17, %s2689_s10 }
  0x58   : > { %p2686_p1 = pnand %p2684_p12, %p2670_p0  ;;  %p2692_p13 = scmp.lt.s32.totalorder %s2690_s15, %s2683_s12 }
  0x5a   : > { %p2687_p5 = pneg %p2686_p1  ;;  %p2693_p6 = por %p2692_p13, %p2691_p4 }
  0x5c   : > { %p2694_p10 = pnand %p2693_p6, %p2687_p5 }
  0x5e   : > { %2697 = shalt.err (!%p2694_p10)
}
  0x5f   : > { %2552 = dma.hbm_to_vmem [thread:$0]  (!%p2997_p11), %s2993_s16, 1024, %s2995_s17, %s3001_s26, %s2804_s19, %s2804_s19, %s2805_s20  }
  0x60   : > { %262 = sbr.rel (%p2894_p8) target bundleno = 844 (0x34c), region = 40  ;;  %s3035_s30 = sand.u32 (!%p2894_p8), 1, %s2792_s22  }
  0x61   : > { %s1997_s14 = sshll.u32 (!%p2894_p8), %s3035_s30, 6  ;;  %s265_s7 = scalar_lea.sflag (!%p2894_p8), [#allocation5], %s3035_s30 }
  0x62   : > { %s3039_s12 = scalar_lea.vmem (!%p2894_p8), [#allocation4], %s1997_s14  ;;  %p3320_p4 = scmp.ne.s32.totalorder (!%p2894_p8), %s3313_s27, 0 }
  0x67   : > { %2771 = dma.done.wait (%p3320_p4), %s265_s7, 1024  }
  0x68   : > { %2773 = vsyncadd (%p3320_p4), %s265_s7, 4294966272  ;;  %p3321_p5 = scmp.eq.s32.totalorder %s2875_s25, 0 }
  0x6a   : > { %2775 = dma.done.wait (%p3321_p5), [#allocation8], 9216   ;;  %p3322_p8 = pmov %p3321_p5 }
  0x6b   : > { %vm310_vm0 = vcmask 130048   ;;  %vm313_vm1 = vcmask 123904   ;;  %v2807_v0 = vmov 0.0   ;;  %v514_v1 = vld [vmem:[#allocation7 + $0x20] sm:$0xff]  ;;  %v515_v2 = vld [vmem:[#allocation7 + $0x28] sm:$0xff]  ;;  %v602_v5 = vld [vmem:[#allocation7 + $0x30] sm:$0xff] }
  0x6c   : > { %2777 = vsyncadd (%p3322_p8), [#allocation8], 4294958080  ;;  %318 = vst.msk [vmem:[#allocation2 + $0x30] sm:$0xff] %vm310_vm0, %v2807_v0  ;;  %v328_v3 = vld [vmem:[%s3039_s12 + $0x20] sm:$0xff]  ;;  %v2366_v4 = vpack.c.bf16 %v515_v2, %v514_v1  ;;  %v603_v6 = vld [vmem:[#allocation7 + $0x38] sm:$0xff]  ;;  %s2000_s27 = sshll.u32 %s3035_s30, 7 }
  0x6d   : > { %319 = vst.msk [vmem:[#allocation2 + $0x38] sm:$0xff] %vm310_vm0, %v2807_v0  ;;  %311 = vst.msk [vmem:[#allocation2] sm:$0xff] %vm310_vm0, %v2807_v0  ;;  %v329_v7 = vld [vmem:[%s3039_s12 + $0x28] sm:$0xff]  ;;  %v2370_v8 = vpack.c.bf16 %v603_v6, %v602_v5  ;;  %v330_v9 = vld [vmem:[%s3039_s12 + $0x30] sm:$0xff]  ;;  %s3107_s20 = scalar_lea.vmem [#allocation10], %s2000_s27  ;;  %s2808_s16 = smov 96  }
  0x6e   : > { %312 = vst.msk [vmem:[#allocation2 + $0x8] sm:$0xff] %vm310_vm0, %v2807_v0  ;;  %315 = vst.msk [vmem:[#allocation2 + $0x18] sm:$0xff] %vm310_vm0, %v2807_v0  ;;  %2367 = vmatprep.subr.bf16.mxu0 %v2366_v4  ;;  %v331_v10 = vld [vmem:[%s3039_s12 + $0x38] sm:$0xff]  ;;  %v324_v11 = vld [vmem:[%s3039_s12] sm:$0xff]  ;;  %s3312_s17 = smov 112   ;;  %s2810_s18 = smov 80  }
  0x6f   : > { %316 = vst.msk [vmem:[#allocation2 + $0x20] sm:$0xff] %vm310_vm0, %v2807_v0  ;;  %321 = vst.msk [vmem:[#allocation2 + $0x48] sm:$0xff] %vm310_vm0, %v2807_v0  ;;  %2369 = vmatpush3.bf16.msra.mxu0 %v2366_v4  ;;  %v325_v12 = vld [vmem:[%s3039_s12 + $0x8] sm:$0xff]  ;;  %v326_v13 = vld [vmem:[%s3039_s12 + $0x10] sm:$0xff]  ;;  %s2811_s26 = smov 64   ;;  %s2812_s13 = smov 48  }
  0x70   : > { %322 = vst.msk [vmem:[#allocation2 + $0x50] sm:$0xff] %vm310_vm0, %v2807_v0  ;;  %1396 = vst [vmem:[#allocation3] sm:$0xff] %v2807_v0  ;;  %2371 = vmatprep.subr.bf16.mxu0 %v2370_v8  ;;  %v690_v14 = vld [vmem:[#allocation7 + $0x40] sm:$0xff]  ;;  %v691_v15 = vld [vmem:[#allocation7 + $0x48] sm:$0xff]  ;;  %s2813_s10 = smov 32   ;;  %s2814_s15 = smov 16  }
  0x71   : > { %1397 = vst [vmem:[#allocation3 + $0x8] sm:$0xff] %v2807_v0  ;;  %1398 = vst [vmem:[#allocation3 + $0x10] sm:$0x3] %v2807_v0  ;;  %v327_v16 = vld [vmem:[%s3039_s12 + $0x18] sm:$0xff]  ;;  %v2374_v18 = vpack.c.bf16 %v691_v15, %v690_v14  ;;  %v347_v19 = vld [vmem:[#allocation7 + $0x10] sm:$0xff]  ;;  %s3160_s12 = scalar_lea.vmem [#allocation11], %s2000_s27 }
  0x72   : > { %320 = vst.msk [vmem:[#allocation2 + $0x40] sm:$0x3] %vm313_vm1, %v2807_v0  ;;  %314 = vst.msk [vmem:[#allocation2 + $0x10] sm:$0x3] %vm313_vm1, %v2807_v0  ;;  %v348_v21 = vld [vmem:[#allocation7 + $0x18] sm:$0xff]  ;;  %v777_v24 = vld [vmem:[#allocation7 + $0x50] sm:$0xff] }
  0x73   : > { %317 = vst.msk [vmem:[#allocation2 + $0x28] sm:$0x3] %vm313_vm1, %v2807_v0  ;;  %323 = vst.msk [vmem:[#allocation2 + $0x58] sm:$0x3] %vm313_vm1, %v2807_v0  ;;  %v2358_v23 = vpack.c.bf16 %v348_v21, %v347_v19  ;;  %v778_v25 = vld [vmem:[#allocation7 + $0x58] sm:$0xff]  ;;  %v342_v29 = vld [vmem:[#allocation7] sm:$0xff] }
  0x74   : > { %336 = vst.msk [vmem:[#allocation2 + $0x31] sm:$0xff] %vm310_vm0, %v328_v3  ;;  %337 = vst.msk [vmem:[#allocation2 + $0x39] sm:$0xff] %vm310_vm0, %v329_v7  ;;  %v343_v30 = vld [vmem:[#allocation7 + $0x8] sm:$0xff]  ;;  %v2378_v32 = vpack.c.bf16 %v778_v25, %v777_v24  ;;  %v1403_v35 = vld [vmem:[#allocation9] sm:$0xff]  ;;  %s3311_s27 = sshll.u32 %s2875_s25, 11  ;;  %s1848_s29 = sshll.u32 %s3107_s20, 4  ;;  %s3184_s29 = int_to_ptr.vmem [resolvable:$true] %s1848_s29 }
  0x75   : > { %338 = vst.msk [vmem:[#allocation2 + $0x49] sm:$0xff] %vm310_vm0, %v330_v9  ;;  %339 = vst.msk [vmem:[#allocation2 + $0x51] sm:$0xff] %vm310_vm0, %v331_v10  ;;  %2359 = vmatprep.subr.bf16.mxu1 %v2358_v23  ;;  %v2362_v33 = vpack.c.bf16 %v343_v30, %v342_v29  ;;  %v1404_v36 = vld [vmem:[#allocation9 + $0x8] sm:$0xff]  ;;  %v1405_v38 = vld [vmem:[#allocation9 + $0x10] sm:$0xff]  ;;  %s3181_s7 = scalar_lea.hbm %s3306_s5, %s3311_s27  ;;  %p3323_p0 = scmp.ne.s32.totalorder %s3318_s9, 0 }
  0x76   : > { %332 = vst.msk [vmem:[#allocation2 + $0x1] sm:$0xff] %vm310_vm0, %v324_v11  ;;  %333 = vst.msk [vmem:[#allocation2 + $0x9] sm:$0xff] %vm310_vm0, %v325_v12  ;;  %2361 = vmatpush3.bf16.msra.mxu1 %v2358_v23  ;;  %v2438_v37 = vpack.c.bf16 %v1404_v36, %v1403_v35  ;;  %v1406_v39 = vld [vmem:[#allocation9 + $0x18] sm:$0xff]  ;;  %v864_v40 = vld [vmem:[#allocation7 + $0x60] sm:$0xff] }
  0x77   : > { %334 = vst.msk [vmem:[#allocation2 + $0x19] sm:$0xff] %vm310_vm0, %v326_v13  ;;  %335 = vst.msk [vmem:[#allocation2 + $0x21] sm:$0xff] %vm310_vm0, %v327_v16  ;;  %2363 = vmatprep.subr.bf16.mxu1 %v2362_v33  ;;  %v865_v41 = vld [vmem:[#allocation7 + $0x68] sm:$0xff]  ;;  %v2442_v43 = vpack.c.bf16 %v1406_v39, %v1405_v38  ;;  %v951_v47 = vld [vmem:[#allocation7 + $0x70] sm:$0xff] }
  0x78   : > { %v2382_v46 = vpack.c.bf16 %v865_v41, %v864_v40  ;;  %v952_v48 = vld [vmem:[#allocation7 + $0x78] sm:$0xff]  ;;  %v1039_v52 = vld [vmem:[#allocation7 + $0x80] sm:$0xff]  ;;  %v1040_v53 = vld [vmem:[#allocation7 + $0x88] sm:$0xff] }
  0x79   : > { %v2386_v51 = vpack.c.bf16 %v952_v48, %v951_v47  ;;  %v2390_v56 = vpack.c.bf16 %v1040_v53, %v1039_v52  ;;  %v1126_v57 = vld [vmem:[#allocation7 + $0x90] sm:$0xff]  ;;  %v1127_v58 = vld [vmem:[#allocation7 + $0x98] sm:$0xff]  ;;  %v1213_v62 = vld [vmem:[#allocation7 + $0xa0] sm:$0xff] }
  0x7a   : > { %v2394_v61 = vpack.c.bf16 %v1127_v58, %v1126_v57  ;;  %v1214_v63 = vld [vmem:[#allocation7 + $0xa8] sm:$0xff]  ;;  %v1300_v3 = vld [vmem:[#allocation7 + $0xb0] sm:$0xff]  ;;  %v1301_v4 = vld [vmem:[#allocation7 + $0xb8] sm:$0xff] }
  0x7b   : > { %v512_v17 = vld [vmem:[#allocation2 + $0x30] sm:$0xff]  ;;  %v513_v20 = vld [vmem:[#allocation2 + $0x38] sm:$0xff]  ;;  %v2398_v2 = vpack.c.bf16 %v1214_v63, %v1213_v62  ;;  %v2402_v7 = vpack.c.bf16 %v1301_v4, %v1300_v3  ;;  %v1423_v9 = vld [vmem:[#allocation9 + $0x88] sm:$0xff] }
  0x7c   : > { %2187 = vmatprep.mubr.msk.f32.mxu0 %vm310_vm0, %v512_v17  ;;  %v600_v22 = vld [vmem:[#allocation2 + $0x48] sm:$0xff]  ;;  %v601_v28 = vld [vmem:[#allocation2 + $0x50] sm:$0xff]  ;;  %v863_v54 = vld [vmem:[#allocation2 + $0x39] sm:$0xff] }
  0x7d   : > { %2188 = vmatmul.mubr.msk.f32.vlgmr.msra.gmra.mrb[0].mxu0 %vm310_vm0, %v513_v20  ;;  %v687_v31 = vld [vmem:[#allocation2 + $0x1] sm:$0xff]  ;;  %v688_v44 = vld [vmem:[#allocation2 + $0x9] sm:$0xff]  ;;  %v862_v50 = vld [vmem:[#allocation2 + $0x31] sm:$0xff] }
  0x7e   : > { %2373 = vmatpush3.bf16.msra.mxu0 %v2370_v8  ;;  %2194 = vmatprep.mubr.msk.f32.mxu0 %vm310_vm0, %v600_v22  ;;  %v345_v26 = vld [vmem:[#allocation2 + $0x18] sm:$0xff]  ;;  %v346_v27 = vld [vmem:[#allocation2 + $0x20] sm:$0xff]  ;;  %v341_v42 = vld [vmem:[#allocation2 + $0x8] sm:$0xff] }
  0x7f   : > { %2375 = vmatprep.subr.bf16.mxu0 %v2374_v18  ;;  %2173 = vmatprep.mubr.msk.f32.mxu1 %vm310_vm0, %v345_v26  ;;  %v340_v34 = vld [vmem:[#allocation2] sm:$0xff]  ;;  %v949_v55 = vld [vmem:[#allocation2 + $0x49] sm:$0xff]  ;;  %v950_v59 = vld [vmem:[#allocation2 + $0x51] sm:$0xff] }
  0x80   : > { %2174 = vmatmul.mubr.msk.f32.vlgmr.msra.gmra.mrb[0].mxu1 %vm310_vm0, %v346_v27  ;;  %v775_v45 = vld [vmem:[#allocation2 + $0x19] sm:$0xff]  ;;  %v776_v49 = vld [vmem:[#allocation2 + $0x21] sm:$0xff]  ;;  %v1037_v0 = vld [vmem:[#allocation2 + $0xa] sm:$0xff] }
  0x81   : > { %2180 = vmatprep.mubr.msk.f32.mxu1 %vm310_vm0, %v340_v34  ;;  %2365 = vmatpush3.bf16.msra.mxu1 %v2362_v33  ;;  %v1036_v60 = vld [vmem:[#allocation2 + $0x2] sm:$0xff]  ;;  %v1124_v1 = vld [vmem:[#allocation2 + $0x1a] sm:$0xff]  ;;  %v1211_v6 = vld [vmem:[#allocation2 + $0x32] sm:$0xff] }
  0x82   : > { %2439 = vmatprep.subr.bf16.mxu1 %v2438_v37  ;;  %v1125_v5 = vld [vmem:[#allocation2 + $0x22] sm:$0xff]  ;;  %v1422_v8 = vld [vmem:[#allocation9 + $0x80] sm:$0xff]  ;;  %v1298_v11 = vld [vmem:[#allocation2 + $0x4a] sm:$0xff] }
  0x83   : > { %v1212_v10 = vld [vmem:[#allocation2 + $0x3a] sm:$0xff]  ;;  %v2406_v12 = vpack.c.bf16 %v1423_v9, %v1422_v8  ;;  %v1424_v13 = vld [vmem:[#allocation9 + $0x90] sm:$0xff]  ;;  %v1425_v14 = vld [vmem:[#allocation9 + $0x98] sm:$0xff] }
  0x84   : > { %v1299_v15 = vld [vmem:[#allocation2 + $0x52] sm:$0xff]  ;;  %v2410_v16 = vpack.c.bf16 %v1425_v14, %v1424_v13  ;;  %v1427_v21 = vld [vmem:[#allocation9 + $0xa8] sm:$0xff]  ;;  %v1409_v22 = vld [vmem:[#allocation9 + $0x30] sm:$0xff] }
  0x85   : > { %2195 = vmatmul.mubr.msk.f32.vlgmr.msra.gmra.mrb[0].mxu0 %vm310_vm0, %v601_v28  ;;  %v1407_v17 = vld [vmem:[#allocation9 + $0x20] sm:$0xff]  ;;  %v1410_v23 = vld [vmem:[#allocation9 + $0x38] sm:$0xff]  ;;  %v1428_v26 = vld [vmem:[#allocation9 + $0xb0] sm:$0xff] }
  0x86   : > { %2377 = vmatpush3.bf16.msra.mxu0 %v2374_v18  ;;  %2201 = vmatprep.mubr.msk.f32.mxu0 %vm310_vm0, %v687_v31  ;;  %v1408_v18 = vld [vmem:[#allocation9 + $0x28] sm:$0xff]  ;;  %v1426_v19 = vld [vmem:[#allocation9 + $0xa0] sm:$0xff]  ;;  %v2450_v25 = vpack.c.bf16 %v1410_v23, %v1409_v22  ;;  %v1429_v27 = vld [vmem:[#allocation9 + $0xb8] sm:$0xff] }
  0x87   : > { %2379 = vmatprep.subr.bf16.mxu0 %v2378_v32  ;;  %v2446_v20 = vpack.c.bf16 %v1408_v18, %v1407_v17  ;;  %v2414_v24 = vpack.c.bf16 %v1427_v21, %v1426_v19  ;;  %v2418_v28 = vpack.c.bf16 %v1429_v27, %v1428_v26  ;;  %v1430_v29 = vld [vmem:[#allocation9 + $0xc0] sm:$0xff]  ;;  %v1431_v30 = vld [vmem:[#allocation9 + $0xc8] sm:$0xff]  ;;  %v1433_v33 = vld [vmem:[#allocation9 + $0xd8] sm:$0xff] }
  0x88   : > { %2181 = vmatmul.mubr.msk.f32.vlgmr.msra.gmra.mrb[0].mxu1 %vm310_vm0, %v341_v42  ;;  %v2422_v31 = vpack.c.bf16 %v1431_v30, %v1430_v29  ;;  %v1411_v35 = vld [vmem:[#allocation9 + $0x40] sm:$0xff]  ;;  %v1412_v36 = vld [vmem:[#allocation9 + $0x48] sm:$0xff]  ;;  %v1413_v41 = vld [vmem:[#allocation9 + $0x50] sm:$0xff] }
  0x89   : > { %2441 = vmatpush3.bf16.msra.mxu1 %v2438_v37  ;;  %v2454_v37 = vpack.c.bf16 %v1412_v36, %v1411_v35  ;;  %v1434_v38 = vld [vmem:[#allocation9 + $0xe0] sm:$0xff]  ;;  %v1435_v39 = vld [vmem:[#allocation9 + $0xe8] sm:$0xff]  ;;  %v1414_v42 = vld [vmem:[#allocation9 + $0x58] sm:$0xff] }
  0x8a   : > { %2443 = vmatprep.subr.bf16.mxu1 %v2442_v43  ;;  %v2430_v40 = vpack.c.bf16 %v1435_v39, %v1434_v38  ;;  %v1415_v47 = vld [vmem:[#allocation9 + $0x60] sm:$0xff]  ;;  %v1416_v48 = vld [vmem:[#allocation9 + $0x68] sm:$0xff]  ;;  %v1593_v3 = vld [vmem:[#allocation9 + $0x110] sm:$0xff] }
  0x8b   : > { %v1591_v53 = vld [vmem:[#allocation9 + $0x100] sm:$0xff]  ;;  %v1594_v4 = vld [vmem:[#allocation9 + $0x118] sm:$0xff]  ;;  %v1601_v18 = vld [vmem:[#allocation9 + $0x150] sm:$0xff] }
  0x8c   : > { %v1595_v9 = vld [vmem:[#allocation9 + $0x120] sm:$0xff]  ;;  %v1598_v13 = vld [vmem:[#allocation9 + $0x138] sm:$0xff]  ;;  %v1604_v22 = vld [vmem:[#allocation9 + $0x168] sm:$0xff] }
  0x8d   : > { %2202 = vmatmul.mubr.msk.f32.vlgmr.msra.gmra.mrb[0].mxu0 %vm310_vm0, %v688_v44  ;;  %2445 = vmatpush3.bf16.msra.mxu1 %v2442_v43  ;;  %v2458_v43 = vpack.c.bf16 %v1414_v42, %v1413_v41  ;;  %v1436_v44 = vld [vmem:[#allocation9 + $0xf0] sm:$0xff]  ;;  %v1602_v19 = vld [vmem:[#allocation9 + $0x158] sm:$0xff]  ;;  %v1603_v21 = vld [vmem:[#allocation9 + $0x160] sm:$0xff] }
  0x8e   : > { %2381 = vmatpush3.bf16.msra.mxu0 %v2378_v32  ;;  %2208 = vmatprep.mubr.msk.f32.mxu0 %vm310_vm0, %v775_v45  ;;  %v1432_v32 = vld [vmem:[#allocation9 + $0xd0] sm:$0xff]  ;;  %v1437_v45 = vld [vmem:[#allocation9 + $0xf8] sm:$0xff]  ;;  %v2494_v23 = vpack.c.bf16 %v1604_v22, %v1603_v21 }
  0x8f   : > { %2383 = vmatprep.subr.bf16.mxu0 %v2382_v46  ;;  %2447 = vmatprep.subr.bf16.mxu1 %v2446_v20  ;;  %v2426_v34 = vpack.c.bf16 %v1433_v33, %v1432_v32 }
  0x91   : > { %2449 = vmatpush3.bf16.msra.mxu1 %v2446_v20  ;;  %v2490_v20 = vpack.c.bf16 %v1602_v19, %v1601_v18 }
  0x92   : > { %2451 = vmatprep.subr.bf16.mxu1 %v2450_v25 }
  0x95   : > { %2209 = vmatmul.mubr.msk.f32.vlgmr.msra.gmra.mrb[0].mxu0 %vm310_vm0, %v776_v49  ;;  %2453 = vmatpush3.bf16.msra.mxu1 %v2450_v25  ;;  %v2462_v49 = vpack.c.bf16 %v1416_v48, %v1415_v47  ;;  %v1606_v25 = vld [vmem:[#allocation9 + $0x178] sm:$0xff] }
  0x96   : > { %2385 = vmatpush3.bf16.msra.mxu0 %v2382_v46  ;;  %2215 = vmatprep.mubr.msk.f32.mxu0 %vm310_vm0, %v862_v50  ;;  %v2434_v46 = vpack.c.bf16 %v1437_v45, %v1436_v44  ;;  %v1417_v50 = vld [vmem:[#allocation9 + $0x70] sm:$0xff]  ;;  %v2027_v45 = vld [vmem:[%s3305_s4] ss:$0 sm:$0xff] }
  0x97   : > { %2387 = vmatprep.subr.bf16.mxu0 %v2386_v51  ;;  %2455 = vmatprep.subr.bf16.mxu1 %v2454_v37 }
  0x99   : > { %2457 = vmatpush3.bf16.msra.mxu1 %v2454_v37 }
  0x9a   : > { %2459 = vmatprep.subr.bf16.mxu1 %v2458_v43 }
  0x9d   : > { %2216 = vmatmul.mubr.msk.f32.vlgmr.msra.gmra.mrb[0].mxu0 %vm310_vm0, %v863_v54  ;;  %2461 = vmatpush3.bf16.msra.mxu1 %v2458_v43  ;;  %v1592_v54 = vld [vmem:[#allocation9 + $0x108] sm:$0xff] }
  0x9e   : > { %2389 = vmatpush3.bf16.msra.mxu0 %v2386_v51  ;;  %2222 = vmatprep.mubr.msk.f32.mxu0 %vm310_vm0, %v949_v55  ;;  %v1418_v51 = vld [vmem:[#allocation9 + $0x78] sm:$0xff]  ;;  %v2470_v55 = vpack.c.bf16 %v1592_v54, %v1591_v53 }
  0x9f   : > { %2391 = vmatprep.subr.bf16.mxu0 %v2390_v56  ;;  %2463 = vmatprep.subr.bf16.mxu1 %v2462_v49  ;;  %v2466_v52 = vpack.c.bf16 %v1418_v51, %v1417_v50 }
  0xa1   : > { %2465 = vmatpush3.bf16.msra.mxu1 %v2462_v49 }
  0xa2   : > { %2467 = vmatprep.subr.bf16.mxu1 %v2466_v52 }
  0xa5   : > { %2223 = vmatmul.mubr.msk.f32.vlgmr.msra.gmra.mrb[0].mxu0 %vm310_vm0, %v950_v59  ;;  %2469 = vmatpush3.bf16.msra.mxu1 %v2466_v52  ;;  %v2026_v59 = vld [vmem:[%s3303_s2] ss:$0 sm:$0xff] }
  0xa6   : > { %2393 = vmatpush3.bf16.msra.mxu0 %v2390_v56  ;;  %2229 = vmatprep.mubr.msk.f32.mxu0 %vm310_vm0, %v1036_v60 }
  0xa7   : > { %2395 = vmatprep.subr.bf16.mxu0 %v2394_v61  ;;  %2471 = vmatprep.subr.bf16.mxu1 %v2470_v55 }
  0xad   : > { %2230 = vmatmul.mubr.msk.f32.vlgmr.msra.gmra.mrb[0].mxu0 %vm310_vm0, %v1037_v0 }
  0xae   : > { %2397 = vmatpush3.bf16.msra.mxu0 %v2394_v61  ;;  %2236 = vmatprep.mubr.msk.f32.mxu0 %vm310_vm0, %v1124_v1 }
  0xaf   : > { %2399 = vmatprep.subr.bf16.mxu0 %v2398_v2 }
  0xb5   : > { %2237 = vmatmul.mubr.msk.f32.vlgmr.msra.gmra.mrb[0].mxu0 %vm310_vm0, %v1125_v5 }
  0xb6   : > { %2401 = vmatpush3.bf16.msra.mxu0 %v2398_v2  ;;  %2243 = vmatprep.mubr.msk.f32.mxu0 %vm310_vm0, %v1211_v6 }
  0xb7   : > { %2403 = vmatprep.subr.bf16.mxu0 %v2402_v7 }
  0xbd   : > { %2244 = vmatmul.mubr.msk.f32.vlgmr.msra.gmra.mrb[0].mxu0 %vm310_vm0, %v1212_v10  ;;  %v1596_v10 = vld [vmem:[#allocation9 + $0x128] sm:$0xff] }
  0xbe   : > { %2405 = vmatpush3.bf16.msra.mxu0 %v2402_v7  ;;  %2250 = vmatprep.mubr.msk.f32.mxu0 %vm310_vm0, %v1298_v11  ;;  %v2474_v7 = vpack.c.bf16 %v1594_v4, %v1593_v3  ;;  %v2478_v11 = vpack.c.bf16 %v1596_v10, %v1595_v9 }
  0xbf   : > { %2407 = vmatprep.subr.bf16.mxu0 %v2406_v12 }
  0xc5   : > { %2251 = vmatmul.mubr.msk.f32.vlgmr.msra.gmra.mrb[0].mxu0 %vm310_vm0, %v1299_v15  ;;  %v1599_v15 = vld [vmem:[#allocation9 + $0x140] sm:$0xff] }
  0xc6   : > { %2409 = vmatpush3.bf16.msra.mxu0 %v2406_v12  ;;  %v1597_v12 = vld [vmem:[#allocation9 + $0x130] sm:$0xff] }
  0xc7   : > { %2411 = vmatprep.subr.bf16.mxu0 %v2410_v16  ;;  %v2482_v14 = vpack.c.bf16 %v1598_v13, %v1597_v12 }
  0xca   : > { %2413 = vmatpush3.bf16.msra.mxu0 %v2410_v16  ;;  %v1600_v16 = vld [vmem:[#allocation9 + $0x148] sm:$0xff] }
  0xcb   : > { %2415 = vmatprep.subr.bf16.mxu0 %v2414_v24  ;;  %v2486_v17 = vpack.c.bf16 %v1600_v16, %v1599_v15 }
  0xce   : > { %2417 = vmatpush3.bf16.msra.mxu0 %v2414_v24  ;;  %v1605_v24 = vld [vmem:[#allocation9 + $0x170] sm:$0xff] }
  0xcf   : > { %2419 = vmatprep.subr.bf16.mxu0 %v2418_v28  ;;  %v2498_v26 = vpack.c.bf16 %v1606_v25, %v1605_v24 }
  0xd2   : > { %2421 = vmatpush3.bf16.msra.mxu0 %v2418_v28 }
  0xd3   : > { %2423 = vmatprep.subr.bf16.mxu0 %v2422_v31 }
  0xd6   : > { %2425 = vmatpush3.bf16.msra.mxu0 %v2422_v31 }
  0xd7   : > { %2427 = vmatprep.subr.bf16.mxu0 %v2426_v34 }
  0xda   : > { %2429 = vmatpush3.bf16.msra.mxu0 %v2426_v34 }
  0xdb   : > { %2431 = vmatprep.subr.bf16.mxu0 %v2430_v40 }
  0xde   : > { %2433 = vmatpush3.bf16.msra.mxu0 %v2430_v40 }
  0xdf   : > { %2435 = vmatprep.subr.bf16.mxu0 %v2434_v46 }
  0xe2   : > { %2437 = vmatpush3.bf16.msra.mxu0 %v2434_v46 }
 0x15b   : > { %v2182_v56 = vpop.f32.mrb[0].mxu1 }
 0x15c   : > { %v502_v57 = vpop.f32.mrb[1].mxu1 }
 0x198   : > { %v2252_v58 = vpop.f32.mrb[0].mxu0 }
 0x199   : > { %v2502_v60 = vadd.f32 %v2252_v58, %v2182_v56  ;;  %v1374_v61 = vpop.f32.mrb[1].mxu0 }
 0x19a   : > { %v2503_v62 = vadd.f32 %v1374_v61, %v502_v57 }
 0x19b   : > { %v1393_v63 = vadd.f32 %v2502_v60, %v2026_v59 }
 0x19c   : > { %v1392_v0 = vadd.f32 %v2503_v62, %v2026_v59 }
 0x19d   : > { %v1395_v1 = vmax.f32 %v1393_v63, 0.0 }
 0x19e   : > { %v1394_v2 = vmax.f32 %v1392_v0, 0.0 }
 0x19f   : > { %1696 = vst.msk [vmem:[%s3107_s20 + $0x8] sm:$0xff] %vm310_vm0, %v1395_v1  ;;  %1400 = vst [vmem:[#allocation3 + $0x9] sm:$0xff] %v1395_v1  ;;  %1723 = vrot.lane.b32.xlu1 %v1395_v1, %s2808_s16  ;;  %1703 = vrot.lane.b32.xlu0 %v1395_v1, %s3312_s17 }
 0x1a0   : > { %1695 = vst.msk [vmem:[%s3107_s20] sm:$0xff] %vm310_vm0, %v1394_v2  ;;  %1399 = vst [vmem:[#allocation3 + $0x1] sm:$0xff] %v1394_v2  ;;  %2285 = vmatprep.mubr.f32.mxu0 %v1394_v2 }
 0x1a1   : > { %2286 = vmatmul.mubr.f32.vlgmr.msra.gmra.mrb[2].mxu0 %v1395_v1 }
 0x1a3   : > { %1741 = vrot.lane.b32.xlu1 %v1395_v1, %s2810_s18  ;;  %1701 = vrot.lane.b32.xlu0 %v1394_v2, %s3312_s17 }
 0x1a6   : > { %v1589_v27 = vld [vmem:[#allocation3 + $0xa] sm:$0xff] }
 0x1a7   : > { %1759 = vrot.lane.b32.xlu1 %v1395_v1, %s2811_s26  ;;  %1721 = vrot.lane.b32.xlu0 %v1394_v2, %s2808_s16  ;;  %v1401_v5 = vld [vmem:[#allocation3] sm:$0xff]  ;;  %v1402_v6 = vld [vmem:[#allocation3 + $0x8] sm:$0xff] }
 0x1a8   : > { %2320 = vmatprep.mubr.f32.mxu1 %v1401_v5  ;;  %v1588_v8 = vld [vmem:[#allocation3 + $0x2] sm:$0xff] }
 0x1a9   : > { %2321 = vmatmul.mubr.f32.vlgmr.msra.gmra.mrb[2].mxu1 %v1402_v6 }
 0x1aa   : > { %2473 = vmatpush3.bf16.msra.mxu1 %v2470_v55  ;;  %2355 = vmatprep.mubr.f32.mxu1 %v1588_v8 }
 0x1ab   : > { %1777 = vrot.lane.b32.xlu1 %v1395_v1, %s2812_s13  ;;  %1739 = vrot.lane.b32.xlu0 %v1394_v2, %s2810_s18 }
 0x1ac   : > { %2475 = vmatprep.subr.bf16.mxu1 %v2474_v7 }
 0x1ae   : > { %2477 = vmatpush3.bf16.msra.mxu1 %v2474_v7 }
 0x1af   : > { %1795 = vrot.lane.b32.xlu1 %v1395_v1, %s2813_s10  ;;  %1757 = vrot.lane.b32.xlu0 %v1394_v2, %s2811_s26 }
 0x1b0   : > { %2479 = vmatprep.subr.bf16.mxu1 %v2478_v11 }
 0x1b2   : > { %2481 = vmatpush3.bf16.msra.mxu1 %v2478_v11 }
 0x1b3   : > { %1813 = vrot.lane.b32.xlu1 %v1395_v1, %s2814_s15  ;;  %1775 = vrot.lane.b32.xlu0 %v1394_v2, %s2812_s13 }
 0x1b4   : > { %2483 = vmatprep.subr.bf16.mxu1 %v2482_v14 }
 0x1b6   : > { %2485 = vmatpush3.bf16.msra.mxu1 %v2482_v14 }
 0x1b7   : > { %1793 = vrot.lane.b32.xlu0 %v1394_v2, %s2813_s10  ;;  %2487 = vmatprep.subr.bf16.mxu1 %v2486_v17 }
 0x1ba   : > { %2489 = vmatpush3.bf16.msra.mxu1 %v2486_v17 }
 0x1bb   : > { %1811 = vrot.lane.b32.xlu0 %v1394_v2, %s2814_s15  ;;  %2491 = vmatprep.subr.bf16.mxu1 %v2490_v20 }
 0x1be   : > { %2493 = vmatpush3.bf16.msra.mxu1 %v2490_v20 }
 0x1bf   : > { %2495 = vmatprep.subr.bf16.mxu1 %v2494_v23 }
 0x1c2   : > { %2497 = vmatpush3.bf16.msra.mxu1 %v2494_v23 }
 0x1c3   : > { %2499 = vmatprep.subr.bf16.mxu1 %v2498_v26 }
 0x1c6   : > { %2501 = vmatpush3.bf16.msra.mxu1 %v2498_v26 }
 0x1c9   : > { %2356 = vmatmul.mubr.f32.vlgmr.msra.gmra.mrb[2].mxu1 %v1589_v27 }
 0x211   : > { %v1724_v28 = vpop.permute.xlu1 %1723  ;;  %v1704_v29 = vpop.permute.xlu0 %1703 }
 0x212   : > { %2033 = vst.msk [vmem:[%s3107_s20 + $0x28] sm:$0xff] %vm310_vm0, %v1724_v28  ;;  %2029 = vst.msk [vmem:[%s3107_s20 + $0x18] sm:$0xff] %vm310_vm0, %v1704_v29 }
 0x215   : > { %v1742_v30 = vpop.permute.xlu1 %1741  ;;  %v1702_v31 = vpop.permute.xlu0 %1701 }
 0x216   : > { %2037 = vst.msk [vmem:[%s3107_s20 + $0x38] sm:$0xff] %vm310_vm0, %v1742_v30  ;;  %2028 = vst.msk [vmem:[%s3107_s20 + $0x10] sm:$0xff] %vm310_vm0, %v1702_v31 }
 0x219   : > { %v1760_v32 = vpop.permute.xlu1 %1759  ;;  %v1722_v33 = vpop.permute.xlu0 %1721 }
 0x21a   : > { %2041 = vst.msk [vmem:[%s3107_s20 + $0x48] sm:$0xff] %vm310_vm0, %v1760_v32  ;;  %2032 = vst.msk [vmem:[%s3107_s20 + $0x20] sm:$0xff] %vm310_vm0, %v1722_v33 }
 0x21d   : > { %v1778_v34 = vpop.permute.xlu1 %1777  ;;  %v1740_v35 = vpop.permute.xlu0 %1739 }
 0x21e   : > { %2045 = vst.msk [vmem:[%s3107_s20 + $0x58] sm:$0xff] %vm310_vm0, %v1778_v34  ;;  %2036 = vst.msk [vmem:[%s3107_s20 + $0x30] sm:$0xff] %vm310_vm0, %v1740_v35 }
 0x221   : > { %v1796_v36 = vpop.permute.xlu1 %1795  ;;  %v1758_v37 = vpop.permute.xlu0 %1757 }
 0x222   : > { %2049 = vst.msk [vmem:[%s3107_s20 + $0x68] sm:$0xff] %vm310_vm0, %v1796_v36  ;;  %2040 = vst.msk [vmem:[%s3107_s20 + $0x40] sm:$0xff] %vm310_vm0, %v1758_v37 }
 0x225   : > { %v1814_v38 = vpop.permute.xlu1 %1813  ;;  %v1776_v39 = vpop.permute.xlu0 %1775 }
 0x226   : > { %2053 = vst.msk [vmem:[%s3107_s20 + $0x78] sm:$0xff] %vm310_vm0, %v1814_v38  ;;  %2044 = vst.msk [vmem:[%s3107_s20 + $0x50] sm:$0xff] %vm310_vm0, %v1776_v39 }
 0x229   : > { %v1794_v40 = vpop.permute.xlu0 %1793 }
 0x22a   : > { %2048 = vst.msk [vmem:[%s3107_s20 + $0x60] sm:$0xff] %vm310_vm0, %v1794_v40 }
 0x22d   : > { %v1812_v41 = vpop.permute.xlu0 %1811 }
 0x22e   : > { %2052 = vst.msk [vmem:[%s3107_s20 + $0x70] sm:$0xff] %vm310_vm0, %v1812_v41  ;;  %s2815_s20 = smov [#allocation10]  }
 0x274   : > { %v2287_v42 = vpop.f32.mrb[2].mxu0 }
 0x275   : > { %v1504_v43 = vpop.f32.mrb[3].mxu0 }
 0x29c   : > { %v2357_v44 = vpop.f32.mrb[2].mxu1 }
 0x29d   : > { %v2504_v46 = vadd.f32 %v2357_v44, %v2287_v42  ;;  %v1673_v47 = vpop.f32.mrb[3].mxu1 }
 0x29e   : > { %v2505_v48 = vadd.f32 %v1673_v47, %v1504_v43 }
 0x29f   : > { %v1692_v49 = vadd.f32 %v2504_v46, %v2027_v45 }
 0x2a0   : > { %v1691_v50 = vadd.f32 %v2505_v48, %v2027_v45 }
 0x2a1   : > { %v1694_v51 = vmax.f32 %v1692_v49, 0.0 }
 0x2a2   : > { %v1693_v52 = vmax.f32 %v1691_v50, 0.0 }
 0x2a3   : > { %1698 = vst.msk [vmem:[%s3160_s12 + $0x8] sm:$0xff] %vm310_vm0, %v1694_v51  ;;  %1714 = vrot.lane.b32.xlu1 %v1694_v51, %s3312_s17 }
 0x2a4   : > { %1697 = vst.msk [vmem:[%s3160_s12] sm:$0xff] %vm310_vm0, %v1693_v52  ;;  %1730 = vrot.lane.b32.xlu0 %v1693_v52, %s2808_s16 }
 0x2a7   : > { %1732 = vrot.lane.b32.xlu1 %v1694_v51, %s2808_s16  ;;  %s1830_s16 = scalar_lea.sflag [#allocation6], %s3035_s30 }
 0x2a8   : > { %1748 = vrot.lane.b32.xlu0 %v1693_v52, %s2810_s18 }
 0x2ab   : > { %1750 = vrot.lane.b32.xlu1 %v1694_v51, %s2810_s18  ;;  %s2698_s18 = scalar_lea.vmem %s3184_s29, 2048 }
 0x2ac   : > { %1766 = vrot.lane.b32.xlu0 %v1693_v52, %s2811_s26  ;;  %p2699_p11 = scmp.ne.s32.totalorder %s3184_s29, %s2698_s18 }
 0x2ae   : > { %p2700_p2 = pnand %p2699_p11, %p3323_p0 }
 0x2af   : > { %1768 = vrot.lane.b32.xlu1 %v1694_v51, %s2811_s26  ;;  %s2702_s26 = sshll.u32 %s2815_s20, 4  ;;  %s2703_s26 = int_to_ptr.vmem [resolvable:$false] %s2702_s26 }
 0x2b0   : > { %1784 = vrot.lane.b32.xlu0 %v1693_v52, %s2812_s13  ;;  %p2701_p3 = pneg %p2700_p2  ;;  %s2704_s19 = scalar_lea.vmem %s2703_s26, 4096 }
 0x2b1   : > { %p2705_p7 = scmp.lt.s32.totalorder %s3184_s29, %s2703_s26  ;;  %p2706_p9 = scmp.lt.s32.totalorder %s2704_s19, %s2698_s18 }
 0x2b3   : > { %1786 = vrot.lane.b32.xlu1 %v1694_v51, %s2812_s13  ;;  %p2707_p12 = por %p2706_p9, %p2705_p7 }
 0x2b4   : > { %1802 = vrot.lane.b32.xlu0 %v1693_v52, %s2813_s10 }
 0x2b5   : > { %p2708_p1 = pnand %p2707_p12, %p2701_p3 }
 0x2b7   : > { %2711 = shalt.err (!%p2708_p1)
}
 0x2b8   : > { %s2712_s13 = scalar_lea.hbm %s3181_s7, 2048  ;;  %s2716_s20 = scalar_lea.hbm %s3306_s5, 4096 }
 0x2b9   : > { %p2713_p13 = scmp.ne.s32.totalorder %s3181_s7, %s2712_s13  ;;  %p2717_p4 = scmp.lt.u32.totalorder %s3181_s7, %s3306_s5 }
 0x2ba   : > { %p2718_p5 = scmp.lt.u32.totalorder %s2716_s20, %s2712_s13  ;;  %p2720_p11 = scmp.lt.u32.totalorder %s2712_s13, %s3181_s7 }
 0x2bb   : > { %p2714_p6 = pnand %p2713_p13, %p3323_p0 }
 0x2bc   : > { %p2719_p8 = por %p2718_p5, %p2717_p4 }
 0x2bd   : > { %p2715_p10 = pneg %p2714_p6 }
 0x2be   : > { %p2721_p2 = por %p2720_p11, %p2719_p8 }
 0x2c0   : > { %p2722_p3 = pnand %p2721_p2, %p2715_p10 }
 0x2c2   : > { %2725 = shalt.err (!%p2722_p3)
}
 0x2c3   : > { %s2816_s18 = smov 128   ;;  %s2817_s27 = smov 8   ;;  %1804 = vrot.lane.b32.xlu1 %v1694_v51, %s2813_s10  ;;  %1820 = vrot.lane.b32.xlu0 %v1693_v52, %s2814_s15 }
 0x2c4   : > { %2538 = dma.vmem_to_hbm [thread:$0]  (%p3323_p0), %s3184_s29, 2048, %s3181_s7, %s1830_s16, %s2816_s18, %s2816_s18, %s2817_s27  }
 0x2c5   : > { %s3324_s17 = smov 112   ;;  %s1864_s10 = sshll.u32 %s3160_s12, 4  ;;  %s3252_s10 = int_to_ptr.vmem [resolvable:$true] %s1864_s10 }
 0x2c6   : > { %s1835_s19 = scalar_lea.sflag [#allocation12], %s3035_s30  ;;  %s2726_s13 = scalar_lea.vmem %s3252_s10, 2048 }
 0x2c7   : > { %1712 = vrot.lane.b32.xlu1 %v1693_v52, %s3324_s17  ;;  %p2727_p7 = scmp.ne.s32.totalorder %s3252_s10, %s2726_s13 }
 0x2c9   : > { %p2728_p9 = pnand %p2727_p7, %p3323_p0 }
 0x2cb   : > { %1822 = vrot.lane.b32.xlu1 %v1694_v51, %s2814_s15  ;;  %s3325_s15 = sshll.u32 %s2875_s25, 11  ;;  %p2729_p12 = pneg %p2728_p9 }
 0x2cc   : > { %s3250_s16 = scalar_lea.hbm %s3307_s6, %s3325_s15  ;;  %s2818_s25 = smov [#allocation11]  }
 0x2cd   : > { %s2730_s14 = sshll.u32 %s2818_s25, 4  ;;  %s2731_s14 = int_to_ptr.vmem [resolvable:$false] %s2730_s14 }
 0x2ce   : > { %s2732_s20 = scalar_lea.vmem %s2731_s14, 4096  ;;  %p2733_p1 = scmp.lt.s32.totalorder %s3252_s10, %s2731_s14 }
 0x2cf   : > { %p2734_p13 = scmp.lt.s32.totalorder %s2732_s20, %s2726_s13 }
 0x2d1   : > { %p2735_p6 = por %p2734_p13, %p2733_p1 }
 0x2d3   : > { %p2736_p10 = pnand %p2735_p6, %p2729_p12 }
 0x315   : > { %v1715_v53 = vpop.permute.xlu1 %1714 }
 0x316   : > { %2031 = vst.msk [vmem:[%s3160_s12 + $0x18] sm:$0xff] %vm310_vm0, %v1715_v53  ;;  %v1731_v54 = vpop.permute.xlu0 %1730 }
 0x317   : > { %2034 = vst.msk [vmem:[%s3160_s12 + $0x20] sm:$0xff] %vm310_vm0, %v1731_v54 }
 0x319   : > { %v1733_v55 = vpop.permute.xlu1 %1732 }
 0x31a   : > { %2035 = vst.msk [vmem:[%s3160_s12 + $0x28] sm:$0xff] %vm310_vm0, %v1733_v55  ;;  %v1749_v56 = vpop.permute.xlu0 %1748 }
 0x31b   : > { %2038 = vst.msk [vmem:[%s3160_s12 + $0x30] sm:$0xff] %vm310_vm0, %v1749_v56 }
 0x31d   : > { %v1751_v57 = vpop.permute.xlu1 %1750 }
 0x31e   : > { %2039 = vst.msk [vmem:[%s3160_s12 + $0x38] sm:$0xff] %vm310_vm0, %v1751_v57  ;;  %v1767_v58 = vpop.permute.xlu0 %1766 }
 0x31f   : > { %2042 = vst.msk [vmem:[%s3160_s12 + $0x40] sm:$0xff] %vm310_vm0, %v1767_v58 }
 0x321   : > { %v1769_v59 = vpop.permute.xlu1 %1768 }
 0x322   : > { %2043 = vst.msk [vmem:[%s3160_s12 + $0x48] sm:$0xff] %vm310_vm0, %v1769_v59  ;;  %v1785_v60 = vpop.permute.xlu0 %1784 }
 0x323   : > { %2046 = vst.msk [vmem:[%s3160_s12 + $0x50] sm:$0xff] %vm310_vm0, %v1785_v60 }
 0x325   : > { %v1787_v61 = vpop.permute.xlu1 %1786 }
 0x326   : > { %2047 = vst.msk [vmem:[%s3160_s12 + $0x58] sm:$0xff] %vm310_vm0, %v1787_v61  ;;  %v1803_v62 = vpop.permute.xlu0 %1802 }
 0x327   : > { %2050 = vst.msk [vmem:[%s3160_s12 + $0x60] sm:$0xff] %vm310_vm0, %v1803_v62 }
 0x335   : > { %v1805_v63 = vpop.permute.xlu1 %1804  ;;  %v1821_v0 = vpop.permute.xlu0 %1820 }
 0x336   : > { %2051 = vst.msk [vmem:[%s3160_s12 + $0x68] sm:$0xff] %vm310_vm0, %v1805_v63  ;;  %2054 = vst.msk [vmem:[%s3160_s12 + $0x70] sm:$0xff] %vm310_vm0, %v1821_v0 }
 0x339   : > { %v1713_v1 = vpop.permute.xlu1 %1712 }
 0x33a   : > { %2030 = vst.msk [vmem:[%s3160_s12 + $0x10] sm:$0xff] %vm310_vm0, %v1713_v1 }
 0x33d   : > { %v1823_v2 = vpop.permute.xlu1 %1822 }
 0x33e   : > { %2055 = vst.msk [vmem:[%s3160_s12 + $0x78] sm:$0xff] %vm310_vm0, %v1823_v2 }
 0x33f   : > { %2739 = shalt.err (!%p2736_p10)
}
 0x340   : > { %s2740_s12 = scalar_lea.hbm %s3250_s16, 2048  ;;  %s2744_s15 = scalar_lea.hbm %s3307_s6, 4096 }
 0x341   : > { %p2741_p4 = scmp.ne.s32.totalorder %s3250_s16, %s2740_s12  ;;  %p2745_p11 = scmp.lt.u32.totalorder %s3250_s16, %s3307_s6 }
 0x342   : > { %p2746_p2 = scmp.lt.u32.totalorder %s2744_s15, %s2740_s12  ;;  %p2748_p7 = scmp.lt.u32.totalorder %s2740_s12, %s3250_s16 }
 0x343   : > { %p2742_p5 = pnand %p2741_p4, %p3323_p0 }
 0x344   : > { %p2747_p3 = por %p2746_p2, %p2745_p11 }
 0x345   : > { %p2743_p8 = pneg %p2742_p5 }
 0x346   : > { %p2749_p9 = por %p2748_p7, %p2747_p3 }
 0x348   : > { %p2750_p12 = pnand %p2749_p9, %p2743_p8 }
 0x34a   : > { %2753 = shalt.err (!%p2750_p12)
}
 0x34b   : > { %2539 = dma.vmem_to_hbm [thread:$0]  (%p3323_p0), %s3252_s10, 2048, %s3250_s16, %s1835_s19, %s2816_s18, %s2816_s18, %s2817_s27  }
 0x34c PF: > { %s1879_s13 = sand.u32 1, %s2788_s21   ;;  %p3326_p1 = scmp.ne.s32.totalorder %s3314_s28, 0 }
 0x34d   : > { %p3327_p13 = scmp.ge.s32.totalorder %s2800_s24, 2  ;;  %s1880_s25 = scalar_lea.sflag [#allocation6], %s1879_s13 }
 0x34f   : > { %p2554_p6 = pnand %p3327_p13, %p3326_p1 }
 0x351   : > { %2779 = dma.done.wait (!%p2554_p6), %s1880_s25, 2048  }
 0x352   : > { %2781 = vsyncadd (!%p2554_p6), %s1880_s25, 4294965248  ;;  %s1889_s9 = scalar_lea.sflag [#allocation12], %s1879_s13 }
 0x353   : > { %2783 = dma.done.wait (!%p2554_p6), %s1889_s9, 2048  }
 0x354   : > { %2785 = vsyncadd (!%p2554_p6), %s1889_s9, 4294965248  ;;  %p24_p0 = scmp.ge.s32.totalorder %s2970_s8, 4   ;;  %s3328_s21 = smov %s2792_s22 }
 0x355   : > { %s3329_s22 = smov %s2796_s23  ;;  %s3330_s23 = smov %s2986_s11 }
 0x356   : > { %s3331_s24 = smov %s2970_s8  ;;  %26 = sbr.rel (!%p24_p0) target bundleno = 8 (0x8), region = 131 }
 0x35d   :  { %1894 = vsyncpa [#allocation5], 1 }
 0x35e   :  { %1896 = vsyncpa [#allocation5 + $0x1], 1 }
 0x35f   :  { %1897 = vsyncpa [#allocation8], 1 }
 0x360   :  { %1898 = vsyncpa [#allocation6], 1 }
 0x361   :  { %1900 = vsyncpa [#allocation6 + $0x1], 1 }
 0x362   :  { %1901 = vsyncpa [#allocation12], 1 }
 0x363   :  { %1903 = vsyncpa [#allocation12 + $0x1], 1 }

</bundles_post_ra>
